<compile_context>
chip_gen: v7x
topology: tpu7x:2x2x1
jax: 0.10.0
libtpu: 0.0.40
codegen_flags: <defaults>
</compile_context>

<pallas_src>
import functools

import jax
import jax.numpy as jnp
from jax.experimental import pallas as pl
from jax.experimental.pallas import tpu as pltpu

LN_EPS = 1e-5
INV_SQRT2 = 0.7071067811865476

# bf16 MXU inputs + f32 accumulation (recommended on v5e/v6e/v7x per review).
# Set to jnp.float32 for bit-exact float32 reference numerics.
MXU_DTYPE = jnp.bfloat16


def _erf(z):
    """erf via Abramowitz & Stegun 7.1.26 (|err| < 1.5e-7, i.e. exact at f32 precision).
    (jax.nn.gelu(approximate=True) would push most of this VALU work to the EUP if a
    tanh-GELU tolerance were acceptable; kept exact to match the reference GELU.)"""
    a1, a2, a3 = 0.254829592, -0.284496736, 1.421413741
    a4, a5, p = -1.453152027, 1.061405429, 0.3275911
    az = jnp.abs(z)
    t = 1.0 / (1.0 + p * az)
    poly = ((((a5 * t + a4) * t + a3) * t + a2) * t + a1) * t
    e = 1.0 - poly * jnp.exp(-az * az)
    return jnp.where(z < 0.0, -e, e)


def _mm(a, b):
    """2-D matmul on the MXU, f32 accumulation."""
    return jnp.dot(a.astype(MXU_DTYPE), b.astype(MXU_DTYPE),
                   preferred_element_type=jnp.float32)


def _bmm(eq, a, b):
    """Group-batched matmul on the MXU, f32 accumulation."""
    return jnp.einsum(eq, a.astype(MXU_DTYPE), b.astype(MXU_DTYPE),
                      preferred_element_type=jnp.float32)


def _layer_norm(x, gamma, beta):
    # two-pass (centered) variance: safer than E[x^2] - mean^2 for large activations
    mean = jnp.mean(x, axis=-1, keepdims=True)
    xc = x - mean
    var = jnp.mean(xc * xc, axis=-1, keepdims=True)
    return xc * jax.lax.rsqrt(var + LN_EPS) * gamma + beta


def _mhsa_block_kernel(x_ref, wqkv_ref, wproj_ref, bproj_ref,
                       ln1g_ref, ln1b_ref, ln2g_ref, ln2b_ref,
                       w1_ref, b1_ref, w2_ref, b2_ref, o_ref,
                       *, n_tokens, num_heads, batch_tile):
    rows, C = x_ref.shape                      # rows = batch_tile * n_tokens
    N, H, bb = n_tokens, num_heads, batch_tile
    d = C // H
    G = H * bb                                 # (head, batch-in-tile) attention groups
    scale = float(d) ** -0.5

    x = x_ref[...].astype(jnp.float32)         # (rows, C)

    # ------------------------- MultiHeadSelfAttention -------------------------
    xn = _layer_norm(x, ln1g_ref[...], ln1b_ref[...])

    # ONE fused QKV matmul: (rows, C) @ (C, 3C) -> (rows, 3C)
    qkv = _mm(xn, wqkv_ref[...])

    def split_heads(col0):
        # (rows, d) static lane slices per head -> (H, bb, N, d) -> (H*bb, N, d) groups
        parts = [qkv[:, col0 + h * d:col0 + (h + 1) * d].reshape(bb, N, d)
                 for h in range(H)]
        return jnp.stack(parts, axis=0).reshape(G, N, d)

    q = split_heads(0)                                        # (G, N, d)
    k = split_heads(C)
    v = split_heads(2 * C)

    s = _bmm('gqd,gkd->gqk', q, k) * scale                    # (G, N, N)
    s = s - jnp.max(s, axis=-1, keepdims=True)                # stable softmax
    p = jnp.exp(s)
    denom = jnp.sum(p, axis=-1, keepdims=True)                # (G, N, 1)
    # TODO(synk): nn.Dropout(p=0.2) on attn/proj is train-mode stochastic; identity in eval.
    ctx = _bmm('gqk,gkd->gqd', p, v)                          # unnormalized (G, N, d)
    ctx = ctx * pl.reciprocal(denom, approx=True)             # fold 1/denom (EUP slot)

    # head-concat back to (rows, C), then ONE (rows, C) @ (C, C) output projection
    ctx_rows = jnp.concatenate(
        [ctx[h * bb:(h + 1) * bb].reshape(rows, d) for h in range(H)], axis=-1)
    x1 = x + _mm(ctx_rows, wproj_ref[...]) + bproj_ref[...]   # residual 1

    # --------------------------------- ResMLP ---------------------------------
    g = _layer_norm(x1, ln2g_ref[...], ln2b_ref[...])
    h = _mm(g, w1_ref[...]) + b1_ref[...]                     # (rows, 4C) lane-dense
    h = h * (0.5 * (1.0 + _erf(h * INV_SQRT2)))               # exact erf-GELU
    y = _mm(h, w2_ref[...]) + b2_ref[...]
    o_ref[...] = (x1 + y).astype(o_ref.dtype)                 # residual 2


def pack_params(params, mxu_dtype=MXU_DTYPE):
    """One-time repack (hoisted out of the per-call path): MXU weights pre-cast to
    bf16, biases & LayerNorm params kept f32 as (1, n) rows."""
    f32 = jnp.float32
    return {
        "wqkv": params["wqkv"].astype(mxu_dtype),        # (C, 3C), cols [q|k|v] head-major
        "wproj": params["wproj"].astype(mxu_dtype),      # (C, C)
        "bproj": params["bproj"].reshape(1, -1).astype(f32),
        "ln1_g": params["ln1_g"].reshape(1, -1).astype(f32),
        "ln1_b": params["ln1_b"].reshape(1, -1).astype(f32),
        "ln2_g": params["ln2_g"].reshape(1, -1).astype(f32),
        "ln2_b": params["ln2_b"].reshape(1, -1).astype(f32),
        "w1": params["w1"].astype(mxu_dtype),            # (C, 4C)
        "b1": params["b1"].reshape(1, -1).astype(f32),
        "w2": params["w2"].astype(mxu_dtype),            # (4C, C)
        "b2": params["b2"].reshape(1, -1).astype(f32),
    }


def _pick_batch_tile(B, N):
    """Target >= ~128 rows per grid step, but keep >= 2 grid steps when B >= 2 so the
    'parallel' grid axis feeds both v7x TensorCores."""
    bt = min(B, max(1, -(-128 // N)))
    if B >= 2:
        bt = max(1, min(bt, B // 2))
    while B % bt:
        bt -= 1
    return bt


def mhsa_block(x, packed, *, num_heads=8, batch_tile=None):
    """x: (B, N, C) float32 -> (B, N, C) float32.  `packed` = pack_params(...)."""
    B, N, C = x.shape
    assert C % num_heads == 0
    bt = batch_tile or _pick_batch_tile(B, N)
    assert B % bt == 0
    rows = bt * N

    x2d = x.reshape(B * N, C)        # fold batch into rows (free, outside the kernel)

    w_args = (packed["wqkv"], packed["wproj"], packed["bproj"],
              packed["ln1_g"], packed["ln1_b"], packed["ln2_g"], packed["ln2_b"],
              packed["w1"], packed["b1"], packed["w2"], packed["b2"])

    kern = functools.partial(_mhsa_block_kernel,
                             n_tokens=N, num_heads=num_heads, batch_tile=bt)

    in_specs = [pl.BlockSpec((rows, C), lambda i: (i, 0))]
    # weights / biases stay resident in VMEM (constant block index across the grid)
    in_specs += [pl.BlockSpec(w.shape, lambda i: (0, 0)) for w in w_args]

    out2d = pl.pallas_call(
        kern,
        out_shape=jax.ShapeDtypeStruct((B * N, C), x.dtype),
        grid_spec=pltpu.PrefetchScalarGridSpec(
            num_scalar_prefetch=0,
            grid=(B // bt,),
            in_specs=in_specs,
            out_specs=pl.BlockSpec((rows, C), lambda i: (i, 0))),
        compiler_params=pltpu.CompilerParams(
            dimension_semantics=("parallel",),
            vmem_limit_bytes=48 * 1024 * 1024),   # fits v7x 64 MiB with headroom
    )(x2d, *w_args)
    return out2d.reshape(B, N, C)


def init_params(key, dim, hidden=None):
    """Deterministic synthetic parameters (shapes follow the PyTorch __init__)."""
    hidden = hidden or 4 * dim
    ks = jax.random.split(key, 7)
    p = {}
    # qkv Linear(dim, 3*dim, bias=False): torch weight (3C, C) -> transposed (C, 3C)
    p["wqkv"] = 0.1 * jax.random.normal(ks[0], (dim, 3 * dim), jnp.float32)
    # proj Linear(dim, dim): torch weight (C, C) -> transposed (C, C), bias (C,)
    p["wproj"] = 0.1 * jax.random.normal(ks[1], (dim, dim), jnp.float32)
    p["bproj"] = 0.1 * jax.random.normal(ks[2], (dim,), jnp.float32)
    # LayerNorm defaults: weight = 1, bias = 0
    p["ln1_g"] = jnp.ones((dim,), jnp.float32)
    p["ln1_b"] = jnp.zeros((dim,), jnp.float32)
    p["ln2_g"] = jnp.ones((dim,), jnp.float32)
    p["ln2_b"] = jnp.zeros((dim,), jnp.float32)
    # ResMLP fc1 / fc2 (torch weights transposed to (in, out))
    p["w1"] = 0.1 * jax.random.normal(ks[3], (dim, hidden), jnp.float32)
    p["b1"] = 0.1 * jax.random.normal(ks[4], (hidden,), jnp.float32)
    p["w2"] = 0.1 * jax.random.normal(ks[5], (hidden, dim), jnp.float32)
    p["b2"] = 0.1 * jax.random.normal(ks[6], (dim,), jnp.float32)
    return p


if __name__ == "__main__":
    key = jax.random.PRNGKey(0)
    kx, kp = jax.random.split(key)
    B, N, dim, heads = 4, 8, 32, 8      # head_dim=4, MLP hidden=128; grid=(2,), 16 rows/step
    x = jax.random.normal(kx, (B, N, dim), jnp.float32)
    params = init_params(kp, dim)
    packed = pack_params(params)        # one-time repack, outside the call path

    fwd = jax.jit(functools.partial(mhsa_block, num_heads=heads))
    out = fwd(x, packed)
    jax.block_until_ready(out)
    assert out.shape == (B, N, dim) and out.dtype == jnp.float32
    print("KERNEL_OK")
</pallas_src>

<mosaic_0001>
module attributes {stable_mosaic.version = 11 : i64} {
  func.func @_mhsa_block_kernel(%arg0: i32, %arg1: memref<16x32xf32, #tpu.memory_space<vmem>>, %arg2: memref<32x96xbf16, #tpu.memory_space<vmem>>, %arg3: memref<32x32xbf16, #tpu.memory_space<vmem>>, %arg4: memref<1x32xf32, #tpu.memory_space<vmem>>, %arg5: memref<1x32xf32, #tpu.memory_space<vmem>>, %arg6: memref<1x32xf32, #tpu.memory_space<vmem>>, %arg7: memref<1x32xf32, #tpu.memory_space<vmem>>, %arg8: memref<1x32xf32, #tpu.memory_space<vmem>>, %arg9: memref<32x128xbf16, #tpu.memory_space<vmem>>, %arg10: memref<1x128xf32, #tpu.memory_space<vmem>>, %arg11: memref<128x32xbf16, #tpu.memory_space<vmem>>, %arg12: memref<1x32xf32, #tpu.memory_space<vmem>>, %arg13: memref<16x32xf32, #tpu.memory_space<vmem>>) attributes {dimension_semantics = [#tpu.dimension_semantics<parallel>], iteration_bounds = array<i64: 2>, scalar_prefetch = 0 : i64, scratch_operands = 0 : i64, tpu.core_type = #tpu.core_type<tc>, window_params = [{transform_indices = @transform_0, window_bounds = array<i64: 16, 32>}, {pipeline_mode = #tpu.pipeline_mode<synchronous>, transform_indices = @transform_1, window_bounds = array<i64: 32, 96>}, {pipeline_mode = #tpu.pipeline_mode<synchronous>, transform_indices = @transform_2, window_bounds = array<i64: 32, 32>}, {pipeline_mode = #tpu.pipeline_mode<synchronous>, transform_indices = @transform_3, window_bounds = array<i64: 1, 32>}, {pipeline_mode = #tpu.pipeline_mode<synchronous>, transform_indices = @transform_4, window_bounds = array<i64: 1, 32>}, {pipeline_mode = #tpu.pipeline_mode<synchronous>, transform_indices = @transform_5, window_bounds = array<i64: 1, 32>}, {pipeline_mode = #tpu.pipeline_mode<synchronous>, transform_indices = @transform_6, window_bounds = array<i64: 1, 32>}, {pipeline_mode = #tpu.pipeline_mode<synchronous>, transform_indices = @transform_7, window_bounds = array<i64: 1, 32>}, {pipeline_mode = #tpu.pipeline_mode<synchronous>, transform_indices = @transform_8, window_bounds = array<i64: 32, 128>}, {pipeline_mode = #tpu.pipeline_mode<synchronous>, transform_indices = @transform_9, window_bounds = array<i64: 1, 128>}, {pipeline_mode = #tpu.pipeline_mode<synchronous>, transform_indices = @transform_10, window_bounds = array<i64: 128, 32>}, {pipeline_mode = #tpu.pipeline_mode<synchronous>, transform_indices = @transform_11, window_bounds = array<i64: 1, 32>}, {transform_indices = @transform_12, window_bounds = array<i64: 16, 32>}]} {
    %c0 = arith.constant 0 : index
    %c0_0 = arith.constant 0 : index
    %0 = vector.load %arg1[%c0, %c0_0] : memref<16x32xf32, #tpu.memory_space<vmem>>, vector<16x32xf32>
    %c0_1 = arith.constant 0 : index
    %c0_2 = arith.constant 0 : index
    %1 = vector.load %arg5[%c0_1, %c0_2] : memref<1x32xf32, #tpu.memory_space<vmem>>, vector<1x32xf32>
    %c0_3 = arith.constant 0 : index
    %c0_4 = arith.constant 0 : index
    %2 = vector.load %arg6[%c0_3, %c0_4] : memref<1x32xf32, #tpu.memory_space<vmem>>, vector<1x32xf32>
    %cst = arith.constant dense<0.000000e+00> : vector<16xf32>
    %3 = vector.multi_reduction <add>, %0, %cst [1] : vector<16x32xf32> to vector<16xf32>
    %4 = vector.shape_cast %3 : vector<16xf32> to vector<16x1xf32>
    %cst_5 = arith.constant 3.200000e+01 : f32
    %5 = vector.broadcast %cst_5 : f32 to vector<16x1xf32>
    %6 = arith.divf %4, %5 : vector<16x1xf32>
    %7 = vector.broadcast %6 : vector<16x1xf32> to vector<16x32xf32>
    %8 = arith.subf %0, %7 : vector<16x32xf32>
    %9 = arith.mulf %8, %8 : vector<16x32xf32>
    %cst_6 = arith.constant dense<0.000000e+00> : vector<16xf32>
    %10 = vector.multi_reduction <add>, %9, %cst_6 [1] : vector<16x32xf32> to vector<16xf32>
    %11 = vector.shape_cast %10 : vector<16xf32> to vector<16x1xf32>
    %cst_7 = arith.constant 3.200000e+01 : f32
    %12 = vector.broadcast %cst_7 : f32 to vector<16x1xf32>
    %13 = arith.divf %11, %12 : vector<16x1xf32>
    %cst_8 = arith.constant 9.99999974E-6 : f32
    %14 = vector.broadcast %cst_8 : f32 to vector<16x1xf32>
    %15 = arith.addf %13, %14 : vector<16x1xf32>
    %16 = math.rsqrt %15 : vector<16x1xf32>
    %17 = vector.broadcast %16 : vector<16x1xf32> to vector<16x32xf32>
    %18 = arith.mulf %8, %17 : vector<16x32xf32>
    %19 = vector.broadcast %1 : vector<1x32xf32> to vector<16x32xf32>
    %20 = arith.mulf %18, %19 : vector<16x32xf32>
    %21 = vector.broadcast %2 : vector<1x32xf32> to vector<16x32xf32>
    %22 = arith.addf %20, %21 : vector<16x32xf32>
    %c0_9 = arith.constant 0 : index
    %c0_10 = arith.constant 0 : index
    %23 = vector.load %arg2[%c0_9, %c0_10] : memref<32x96xbf16, #tpu.memory_space<vmem>>, vector<32x96xbf16>
    %24 = arith.truncf %22 : vector<16x32xf32> to vector<16x32xbf16>
    %cst_11 = arith.constant dense<0.000000e+00> : vector<16x96xf32>
    %25 = tpu.matmul %24, %23, %cst_11 {dimension_numbers = #tpu.dot_dimension_numbers<[1], [0], [0], [1], [0, 0, 1, 1], [], []>} : vector<16x32xbf16>, vector<32x96xbf16>, vector<16x96xf32> -> vector<16x96xf32>
    %26 = vector.extract_strided_slice %25 {offsets = [0, 0], sizes = [16, 4], strides = [1, 1]} : vector<16x96xf32> to vector<16x4xf32>
    %27 = vector.shape_cast %26 : vector<16x4xf32> to vector<2x8x4xf32>
    %28 = vector.extract_strided_slice %25 {offsets = [0, 4], sizes = [16, 4], strides = [1, 1]} : vector<16x96xf32> to vector<16x4xf32>
    %29 = vector.shape_cast %28 : vector<16x4xf32> to vector<2x8x4xf32>
    %30 = vector.extract_strided_slice %25 {offsets = [0, 8], sizes = [16, 4], strides = [1, 1]} : vector<16x96xf32> to vector<16x4xf32>
    %31 = vector.shape_cast %30 : vector<16x4xf32> to vector<2x8x4xf32>
    %32 = vector.extract_strided_slice %25 {offsets = [0, 12], sizes = [16, 4], strides = [1, 1]} : vector<16x96xf32> to vector<16x4xf32>
    %33 = vector.shape_cast %32 : vector<16x4xf32> to vector<2x8x4xf32>
    %34 = vector.extract_strided_slice %25 {offsets = [0, 16], sizes = [16, 4], strides = [1, 1]} : vector<16x96xf32> to vector<16x4xf32>
    %35 = vector.shape_cast %34 : vector<16x4xf32> to vector<2x8x4xf32>
    %36 = vector.extract_strided_slice %25 {offsets = [0, 20], sizes = [16, 4], strides = [1, 1]} : vector<16x96xf32> to vector<16x4xf32>
    %37 = vector.shape_cast %36 : vector<16x4xf32> to vector<2x8x4xf32>
    %38 = vector.extract_strided_slice %25 {offsets = [0, 24], sizes = [16, 4], strides = [1, 1]} : vector<16x96xf32> to vector<16x4xf32>
    %39 = vector.shape_cast %38 : vector<16x4xf32> to vector<2x8x4xf32>
    %40 = vector.extract_strided_slice %25 {offsets = [0, 28], sizes = [16, 4], strides = [1, 1]} : vector<16x96xf32> to vector<16x4xf32>
    %41 = vector.shape_cast %40 : vector<16x4xf32> to vector<2x8x4xf32>
    %42 = vector.shape_cast %27 : vector<2x8x4xf32> to vector<1x2x8x4xf32>
    %43 = vector.shape_cast %29 : vector<2x8x4xf32> to vector<1x2x8x4xf32>
    %44 = vector.shape_cast %31 : vector<2x8x4xf32> to vector<1x2x8x4xf32>
    %45 = vector.shape_cast %33 : vector<2x8x4xf32> to vector<1x2x8x4xf32>
    %46 = vector.shape_cast %35 : vector<2x8x4xf32> to vector<1x2x8x4xf32>
    %47 = vector.shape_cast %37 : vector<2x8x4xf32> to vector<1x2x8x4xf32>
    %48 = vector.shape_cast %39 : vector<2x8x4xf32> to vector<1x2x8x4xf32>
    %49 = vector.shape_cast %41 : vector<2x8x4xf32> to vector<1x2x8x4xf32>
    %50 = tpu.concatenate %42, %43, %44, %45, %46, %47, %48, %49 in 0 : vector<1x2x8x4xf32>, vector<1x2x8x4xf32>, vector<1x2x8x4xf32>, vector<1x2x8x4xf32>, vector<1x2x8x4xf32>, vector<1x2x8x4xf32>, vector<1x2x8x4xf32>, vector<1x2x8x4xf32> -> vector<8x2x8x4xf32>
    %51 = vector.shape_cast %50 : vector<8x2x8x4xf32> to vector<16x8x4xf32>
    %52 = vector.extract_strided_slice %25 {offsets = [0, 32], sizes = [16, 4], strides = [1, 1]} : vector<16x96xf32> to vector<16x4xf32>
    %53 = vector.shape_cast %52 : vector<16x4xf32> to vector<2x8x4xf32>
    %54 = vector.extract_strided_slice %25 {offsets = [0, 36], sizes = [16, 4], strides = [1, 1]} : vector<16x96xf32> to vector<16x4xf32>
    %55 = vector.shape_cast %54 : vector<16x4xf32> to vector<2x8x4xf32>
    %56 = vector.extract_strided_slice %25 {offsets = [0, 40], sizes = [16, 4], strides = [1, 1]} : vector<16x96xf32> to vector<16x4xf32>
    %57 = vector.shape_cast %56 : vector<16x4xf32> to vector<2x8x4xf32>
    %58 = vector.extract_strided_slice %25 {offsets = [0, 44], sizes = [16, 4], strides = [1, 1]} : vector<16x96xf32> to vector<16x4xf32>
    %59 = vector.shape_cast %58 : vector<16x4xf32> to vector<2x8x4xf32>
    %60 = vector.extract_strided_slice %25 {offsets = [0, 48], sizes = [16, 4], strides = [1, 1]} : vector<16x96xf32> to vector<16x4xf32>
    %61 = vector.shape_cast %60 : vector<16x4xf32> to vector<2x8x4xf32>
    %62 = vector.extract_strided_slice %25 {offsets = [0, 52], sizes = [16, 4], strides = [1, 1]} : vector<16x96xf32> to vector<16x4xf32>
    %63 = vector.shape_cast %62 : vector<16x4xf32> to vector<2x8x4xf32>
    %64 = vector.extract_strided_slice %25 {offsets = [0, 56], sizes = [16, 4], strides = [1, 1]} : vector<16x96xf32> to vector<16x4xf32>
    %65 = vector.shape_cast %64 : vector<16x4xf32> to vector<2x8x4xf32>
    %66 = vector.extract_strided_slice %25 {offsets = [0, 60], sizes = [16, 4], strides = [1, 1]} : vector<16x96xf32> to vector<16x4xf32>
    %67 = vector.shape_cast %66 : vector<16x4xf32> to vector<2x8x4xf32>
    %68 = vector.shape_cast %53 : vector<2x8x4xf32> to vector<1x2x8x4xf32>
    %69 = vector.shape_cast %55 : vector<2x8x4xf32> to vector<1x2x8x4xf32>
    %70 = vector.shape_cast %57 : vector<2x8x4xf32> to vector<1x2x8x4xf32>
    %71 = vector.shape_cast %59 : vector<2x8x4xf32> to vector<1x2x8x4xf32>
    %72 = vector.shape_cast %61 : vector<2x8x4xf32> to vector<1x2x8x4xf32>
    %73 = vector.shape_cast %63 : vector<2x8x4xf32> to vector<1x2x8x4xf32>
    %74 = vector.shape_cast %65 : vector<2x8x4xf32> to vector<1x2x8x4xf32>
    %75 = vector.shape_cast %67 : vector<2x8x4xf32> to vector<1x2x8x4xf32>
    %76 = tpu.concatenate %68, %69, %70, %71, %72, %73, %74, %75 in 0 : vector<1x2x8x4xf32>, vector<1x2x8x4xf32>, vector<1x2x8x4xf32>, vector<1x2x8x4xf32>, vector<1x2x8x4xf32>, vector<1x2x8x4xf32>, vector<1x2x8x4xf32>, vector<1x2x8x4xf32> -> vector<8x2x8x4xf32>
    %77 = vector.shape_cast %76 : vector<8x2x8x4xf32> to vector<16x8x4xf32>
    %78 = vector.extract_strided_slice %25 {offsets = [0, 64], sizes = [16, 4], strides = [1, 1]} : vector<16x96xf32> to vector<16x4xf32>
    %79 = vector.shape_cast %78 : vector<16x4xf32> to vector<2x8x4xf32>
    %80 = vector.extract_strided_slice %25 {offsets = [0, 68], sizes = [16, 4], strides = [1, 1]} : vector<16x96xf32> to vector<16x4xf32>
    %81 = vector.shape_cast %80 : vector<16x4xf32> to vector<2x8x4xf32>
    %82 = vector.extract_strided_slice %25 {offsets = [0, 72], sizes = [16, 4], strides = [1, 1]} : vector<16x96xf32> to vector<16x4xf32>
    %83 = vector.shape_cast %82 : vector<16x4xf32> to vector<2x8x4xf32>
    %84 = vector.extract_strided_slice %25 {offsets = [0, 76], sizes = [16, 4], strides = [1, 1]} : vector<16x96xf32> to vector<16x4xf32>
    %85 = vector.shape_cast %84 : vector<16x4xf32> to vector<2x8x4xf32>
    %86 = vector.extract_strided_slice %25 {offsets = [0, 80], sizes = [16, 4], strides = [1, 1]} : vector<16x96xf32> to vector<16x4xf32>
    %87 = vector.shape_cast %86 : vector<16x4xf32> to vector<2x8x4xf32>
    %88 = vector.extract_strided_slice %25 {offsets = [0, 84], sizes = [16, 4], strides = [1, 1]} : vector<16x96xf32> to vector<16x4xf32>
    %89 = vector.shape_cast %88 : vector<16x4xf32> to vector<2x8x4xf32>
    %90 = vector.extract_strided_slice %25 {offsets = [0, 88], sizes = [16, 4], strides = [1, 1]} : vector<16x96xf32> to vector<16x4xf32>
    %91 = vector.shape_cast %90 : vector<16x4xf32> to vector<2x8x4xf32>
    %92 = vector.extract_strided_slice %25 {offsets = [0, 92], sizes = [16, 4], strides = [1, 1]} : vector<16x96xf32> to vector<16x4xf32>
    %93 = vector.shape_cast %92 : vector<16x4xf32> to vector<2x8x4xf32>
    %94 = vector.shape_cast %79 : vector<2x8x4xf32> to vector<1x2x8x4xf32>
    %95 = vector.shape_cast %81 : vector<2x8x4xf32> to vector<1x2x8x4xf32>
    %96 = vector.shape_cast %83 : vector<2x8x4xf32> to vector<1x2x8x4xf32>
    %97 = vector.shape_cast %85 : vector<2x8x4xf32> to vector<1x2x8x4xf32>
    %98 = vector.shape_cast %87 : vector<2x8x4xf32> to vector<1x2x8x4xf32>
    %99 = vector.shape_cast %89 : vector<2x8x4xf32> to vector<1x2x8x4xf32>
    %100 = vector.shape_cast %91 : vector<2x8x4xf32> to vector<1x2x8x4xf32>
    %101 = vector.shape_cast %93 : vector<2x8x4xf32> to vector<1x2x8x4xf32>
    %102 = tpu.concatenate %94, %95, %96, %97, %98, %99, %100, %101 in 0 : vector<1x2x8x4xf32>, vector<1x2x8x4xf32>, vector<1x2x8x4xf32>, vector<1x2x8x4xf32>, vector<1x2x8x4xf32>, vector<1x2x8x4xf32>, vector<1x2x8x4xf32>, vector<1x2x8x4xf32> -> vector<8x2x8x4xf32>
    %103 = vector.shape_cast %102 : vector<8x2x8x4xf32> to vector<16x8x4xf32>
    %104 = arith.truncf %51 : vector<16x8x4xf32> to vector<16x8x4xbf16>
    %105 = arith.truncf %77 : vector<16x8x4xf32> to vector<16x8x4xbf16>
    "tpu.trace_start"() <{level = 10 : i32, message = "gqd,gkd->gqk"}> : () -> ()
    %cst_12 = arith.constant dense<0.000000e+00> : vector<16x8x8xf32>
    %106 = tpu.matmul %104, %105, %cst_12 {dimension_numbers = #tpu.dot_dimension_numbers<[2], [2], [1], [1], [0, 0, 0, 1, 1, 1], [0], [0]>} : vector<16x8x4xbf16>, vector<16x8x4xbf16>, vector<16x8x8xf32> -> vector<16x8x8xf32>
    "tpu.trace_stop"() : () -> ()
    %cst_13 = arith.constant 5.000000e-01 : f32
    %107 = vector.broadcast %cst_13 : f32 to vector<16x8x8xf32>
    %108 = arith.mulf %106, %107 : vector<16x8x8xf32>
    %cst_14 = arith.constant dense<0xFF800000> : vector<16x8xf32>
    %109 = vector.multi_reduction <maximumf>, %108, %cst_14 [2] : vector<16x8x8xf32> to vector<16x8xf32>
    %110 = vector.shape_cast %109 : vector<16x8xf32> to vector<16x8x1xf32>
    %111 = vector.broadcast %110 : vector<16x8x1xf32> to vector<16x8x8xf32>
    %112 = arith.subf %108, %111 : vector<16x8x8xf32>
    %113 = math.exp %112 : vector<16x8x8xf32>
    %cst_15 = arith.constant dense<0.000000e+00> : vector<16x8xf32>
    %114 = vector.multi_reduction <add>, %113, %cst_15 [2] : vector<16x8x8xf32> to vector<16x8xf32>
    %115 = vector.shape_cast %114 : vector<16x8xf32> to vector<16x8x1xf32>
    %116 = arith.truncf %113 : vector<16x8x8xf32> to vector<16x8x8xbf16>
    %117 = arith.truncf %103 : vector<16x8x4xf32> to vector<16x8x4xbf16>
    "tpu.trace_start"() <{level = 10 : i32, message = "gqk,gkd->gqd"}> : () -> ()
    %cst_16 = arith.constant dense<0.000000e+00> : vector<16x8x4xf32>
    %118 = tpu.matmul %116, %117, %cst_16 {dimension_numbers = #tpu.dot_dimension_numbers<[2], [1], [1], [2], [0, 0, 0, 1, 1, 2], [0], [0]>} : vector<16x8x8xbf16>, vector<16x8x4xbf16>, vector<16x8x4xf32> -> vector<16x8x4xf32>
    "tpu.trace_stop"() : () -> ()
    %119 = tpu.reciprocal %115 {approx = true} : vector<16x8x1xf32> -> vector<16x8x1xf32>
    %120 = vector.broadcast %119 : vector<16x8x1xf32> to vector<16x8x4xf32>
    %121 = arith.mulf %118, %120 : vector<16x8x4xf32>
    %122 = vector.extract_strided_slice %121 {offsets = [0, 0, 0], sizes = [2, 8, 4], strides = [1, 1, 1]} : vector<16x8x4xf32> to vector<2x8x4xf32>
    %123 = vector.shape_cast %122 : vector<2x8x4xf32> to vector<16x4xf32>
    %124 = vector.extract_strided_slice %121 {offsets = [2, 0, 0], sizes = [2, 8, 4], strides = [1, 1, 1]} : vector<16x8x4xf32> to vector<2x8x4xf32>
    %125 = vector.shape_cast %124 : vector<2x8x4xf32> to vector<16x4xf32>
    %126 = vector.extract_strided_slice %121 {offsets = [4, 0, 0], sizes = [2, 8, 4], strides = [1, 1, 1]} : vector<16x8x4xf32> to vector<2x8x4xf32>
    %127 = vector.shape_cast %126 : vector<2x8x4xf32> to vector<16x4xf32>
    %128 = vector.extract_strided_slice %121 {offsets = [6, 0, 0], sizes = [2, 8, 4], strides = [1, 1, 1]} : vector<16x8x4xf32> to vector<2x8x4xf32>
    %129 = vector.shape_cast %128 : vector<2x8x4xf32> to vector<16x4xf32>
    %130 = vector.extract_strided_slice %121 {offsets = [8, 0, 0], sizes = [2, 8, 4], strides = [1, 1, 1]} : vector<16x8x4xf32> to vector<2x8x4xf32>
    %131 = vector.shape_cast %130 : vector<2x8x4xf32> to vector<16x4xf32>
    %132 = vector.extract_strided_slice %121 {offsets = [10, 0, 0], sizes = [2, 8, 4], strides = [1, 1, 1]} : vector<16x8x4xf32> to vector<2x8x4xf32>
    %133 = vector.shape_cast %132 : vector<2x8x4xf32> to vector<16x4xf32>
    %134 = vector.extract_strided_slice %121 {offsets = [12, 0, 0], sizes = [2, 8, 4], strides = [1, 1, 1]} : vector<16x8x4xf32> to vector<2x8x4xf32>
    %135 = vector.shape_cast %134 : vector<2x8x4xf32> to vector<16x4xf32>
    %136 = vector.extract_strided_slice %121 {offsets = [14, 0, 0], sizes = [2, 8, 4], strides = [1, 1, 1]} : vector<16x8x4xf32> to vector<2x8x4xf32>
    %137 = vector.shape_cast %136 : vector<2x8x4xf32> to vector<16x4xf32>
    %138 = tpu.concatenate %123, %125, %127, %129, %131, %133, %135, %137 in 1 : vector<16x4xf32>, vector<16x4xf32>, vector<16x4xf32>, vector<16x4xf32>, vector<16x4xf32>, vector<16x4xf32>, vector<16x4xf32>, vector<16x4xf32> -> vector<16x32xf32>
    %c0_17 = arith.constant 0 : index
    %c0_18 = arith.constant 0 : index
    %139 = vector.load %arg3[%c0_17, %c0_18] : memref<32x32xbf16, #tpu.memory_space<vmem>>, vector<32x32xbf16>
    %140 = arith.truncf %138 : vector<16x32xf32> to vector<16x32xbf16>
    %cst_19 = arith.constant dense<0.000000e+00> : vector<16x32xf32>
    %141 = tpu.matmul %140, %139, %cst_19 {dimension_numbers = #tpu.dot_dimension_numbers<[1], [0], [0], [1], [0, 0, 1, 1], [], []>} : vector<16x32xbf16>, vector<32x32xbf16>, vector<16x32xf32> -> vector<16x32xf32>
    %142 = arith.addf %0, %141 : vector<16x32xf32>
    %c0_20 = arith.constant 0 : index
    %c0_21 = arith.constant 0 : index
    %143 = vector.load %arg4[%c0_20, %c0_21] : memref<1x32xf32, #tpu.memory_space<vmem>>, vector<1x32xf32>
    %144 = vector.broadcast %143 : vector<1x32xf32> to vector<16x32xf32>
    %145 = arith.addf %142, %144 : vector<16x32xf32>
    %c0_22 = arith.constant 0 : index
    %c0_23 = arith.constant 0 : index
    %146 = vector.load %arg7[%c0_22, %c0_23] : memref<1x32xf32, #tpu.memory_space<vmem>>, vector<1x32xf32>
    %c0_24 = arith.constant 0 : index
    %c0_25 = arith.constant 0 : index
    %147 = vector.load %arg8[%c0_24, %c0_25] : memref<1x32xf32, #tpu.memory_space<vmem>>, vector<1x32xf32>
    %cst_26 = arith.constant dense<0.000000e+00> : vector<16xf32>
    %148 = vector.multi_reduction <add>, %145, %cst_26 [1] : vector<16x32xf32> to vector<16xf32>
    %149 = vector.shape_cast %148 : vector<16xf32> to vector<16x1xf32>
    %cst_27 = arith.constant 3.200000e+01 : f32
    %150 = vector.broadcast %cst_27 : f32 to vector<16x1xf32>
    %151 = arith.divf %149, %150 : vector<16x1xf32>
    %152 = vector.broadcast %151 : vector<16x1xf32> to vector<16x32xf32>
    %153 = arith.subf %145, %152 : vector<16x32xf32>
    %154 = arith.mulf %153, %153 : vector<16x32xf32>
    %cst_28 = arith.constant dense<0.000000e+00> : vector<16xf32>
    %155 = vector.multi_reduction <add>, %154, %cst_28 [1] : vector<16x32xf32> to vector<16xf32>
    %156 = vector.shape_cast %155 : vector<16xf32> to vector<16x1xf32>
    %cst_29 = arith.constant 3.200000e+01 : f32
    %157 = vector.broadcast %cst_29 : f32 to vector<16x1xf32>
    %158 = arith.divf %156, %157 : vector<16x1xf32>
    %cst_30 = arith.constant 9.99999974E-6 : f32
    %159 = vector.broadcast %cst_30 : f32 to vector<16x1xf32>
    %160 = arith.addf %158, %159 : vector<16x1xf32>
    %161 = math.rsqrt %160 : vector<16x1xf32>
    %162 = vector.broadcast %161 : vector<16x1xf32> to vector<16x32xf32>
    %163 = arith.mulf %153, %162 : vector<16x32xf32>
    %164 = vector.broadcast %146 : vector<1x32xf32> to vector<16x32xf32>
    %165 = arith.mulf %163, %164 : vector<16x32xf32>
    %166 = vector.broadcast %147 : vector<1x32xf32> to vector<16x32xf32>
    %167 = arith.addf %165, %166 : vector<16x32xf32>
    %c0_31 = arith.constant 0 : index
    %c0_32 = arith.constant 0 : index
    %168 = vector.load %arg9[%c0_31, %c0_32] : memref<32x128xbf16, #tpu.memory_space<vmem>>, vector<32x128xbf16>
    %169 = arith.truncf %167 : vector<16x32xf32> to vector<16x32xbf16>
    %cst_33 = arith.constant dense<0.000000e+00> : vector<16x128xf32>
    %170 = tpu.matmul %169, %168, %cst_33 {dimension_numbers = #tpu.dot_dimension_numbers<[1], [0], [0], [1], [0, 0, 1, 1], [], []>} : vector<16x32xbf16>, vector<32x128xbf16>, vector<16x128xf32> -> vector<16x128xf32>
    %c0_34 = arith.constant 0 : index
    %c0_35 = arith.constant 0 : index
    %171 = vector.load %arg10[%c0_34, %c0_35] : memref<1x128xf32, #tpu.memory_space<vmem>>, vector<1x128xf32>
    %172 = vector.broadcast %171 : vector<1x128xf32> to vector<16x128xf32>
    %173 = arith.addf %170, %172 : vector<16x128xf32>
    %cst_36 = arith.constant 0.707106769 : f32
    %174 = vector.broadcast %cst_36 : f32 to vector<16x128xf32>
    %175 = arith.mulf %173, %174 : vector<16x128xf32>
    %176 = math.absf %175 : vector<16x128xf32>
    %cst_37 = arith.constant 0.327591091 : f32
    %177 = vector.broadcast %cst_37 : f32 to vector<16x128xf32>
    %178 = arith.mulf %177, %176 : vector<16x128xf32>
    %cst_38 = arith.constant 1.000000e+00 : f32
    %179 = vector.broadcast %cst_38 : f32 to vector<16x128xf32>
    %180 = arith.addf %179, %178 : vector<16x128xf32>
    %cst_39 = arith.constant 1.000000e+00 : f32
    %181 = vector.broadcast %cst_39 : f32 to vector<16x128xf32>
    %182 = arith.divf %181, %180 : vector<16x128xf32>
    %cst_40 = arith.constant 1.06140542 : f32
    %183 = vector.broadcast %cst_40 : f32 to vector<16x128xf32>
    %184 = arith.mulf %183, %182 : vector<16x128xf32>
    %cst_41 = arith.constant -1.45315206 : f32
    %185 = vector.broadcast %cst_41 : f32 to vector<16x128xf32>
    %186 = arith.addf %184, %185 : vector<16x128xf32>
    %187 = arith.mulf %186, %182 : vector<16x128xf32>
    %cst_42 = arith.constant 1.42141378 : f32
    %188 = vector.broadcast %cst_42 : f32 to vector<16x128xf32>
    %189 = arith.addf %187, %188 : vector<16x128xf32>
    %190 = arith.mulf %189, %182 : vector<16x128xf32>
    %cst_43 = arith.constant -0.284496725 : f32
    %191 = vector.broadcast %cst_43 : f32 to vector<16x128xf32>
    %192 = arith.addf %190, %191 : vector<16x128xf32>
    %193 = arith.mulf %192, %182 : vector<16x128xf32>
    %cst_44 = arith.constant 0.254829586 : f32
    %194 = vector.broadcast %cst_44 : f32 to vector<16x128xf32>
    %195 = arith.addf %193, %194 : vector<16x128xf32>
    %196 = arith.mulf %195, %182 : vector<16x128xf32>
    %cst_45 = arith.constant 0.000000e+00 : f32
    %197 = vector.broadcast %cst_45 : f32 to vector<16x128xf32>
    %198 = arith.subf %197, %176 : vector<16x128xf32>
    %199 = arith.mulf %198, %176 : vector<16x128xf32>
    %200 = math.exp %199 : vector<16x128xf32>
    %201 = arith.mulf %196, %200 : vector<16x128xf32>
    %cst_46 = arith.constant 1.000000e+00 : f32
    %202 = vector.broadcast %cst_46 : f32 to vector<16x128xf32>
    %203 = arith.subf %202, %201 : vector<16x128xf32>
    %cst_47 = arith.constant 0.000000e+00 : f32
    %204 = vector.broadcast %cst_47 : f32 to vector<16x128xf32>
    %205 = arith.cmpf olt, %175, %204 : vector<16x128xf32>
    %cst_48 = arith.constant 0.000000e+00 : f32
    %206 = vector.broadcast %cst_48 : f32 to vector<16x128xf32>
    %207 = arith.subf %206, %203 : vector<16x128xf32>
    %208 = arith.select %205, %207, %203 : vector<16x128xi1>, vector<16x128xf32>
    %cst_49 = arith.constant 1.000000e+00 : f32
    %209 = vector.broadcast %cst_49 : f32 to vector<16x128xf32>
    %210 = arith.addf %209, %208 : vector<16x128xf32>
    %cst_50 = arith.constant 5.000000e-01 : f32
    %211 = vector.broadcast %cst_50 : f32 to vector<16x128xf32>
    %212 = arith.mulf %211, %210 : vector<16x128xf32>
    %213 = arith.mulf %173, %212 : vector<16x128xf32>
    %c0_51 = arith.constant 0 : index
    %c0_52 = arith.constant 0 : index
    %214 = vector.load %arg11[%c0_51, %c0_52] : memref<128x32xbf16, #tpu.memory_space<vmem>>, vector<128x32xbf16>
    %215 = arith.truncf %213 : vector<16x128xf32> to vector<16x128xbf16>
    %cst_53 = arith.constant dense<0.000000e+00> : vector<16x32xf32>
    %216 = tpu.matmul %215, %214, %cst_53 {dimension_numbers = #tpu.dot_dimension_numbers<[1], [0], [0], [1], [0, 0, 1, 1], [], []>} : vector<16x128xbf16>, vector<128x32xbf16>, vector<16x32xf32> -> vector<16x32xf32>
    %c0_54 = arith.constant 0 : index
    %c0_55 = arith.constant 0 : index
    %217 = vector.load %arg12[%c0_54, %c0_55] : memref<1x32xf32, #tpu.memory_space<vmem>>, vector<1x32xf32>
    %218 = vector.broadcast %217 : vector<1x32xf32> to vector<16x32xf32>
    %219 = arith.addf %216, %218 : vector<16x32xf32>
    %220 = arith.addf %145, %219 : vector<16x32xf32>
    %c0_56 = arith.constant 0 : index
    %c0_57 = arith.constant 0 : index
    %221 = vector.load %arg13[%c0_56, %c0_57] : memref<16x32xf32, #tpu.memory_space<vmem>>, vector<16x32xf32>
    tpu.vector_store %arg13[%c0_56, %c0_57], %220 {strides = array<i32>} : memref<16x32xf32, #tpu.memory_space<vmem>>, vector<16x32xf32>,
    return
  }
  func.func @transform_0(%arg0: i32) -> (i32, i32) {
    %c0_i32 = arith.constant 0 : i32
    %c0_i32_0 = arith.constant 0 : i32
    return %arg0, %c0_i32 : i32, i32
  }
  func.func @transform_1(%arg0: i32) -> (i32, i32) {
    %c0_i32 = arith.constant 0 : i32
    %c0_i32_0 = arith.constant 0 : i32
    %c0_i32_1 = arith.constant 0 : i32
    return %c0_i32, %c0_i32_0 : i32, i32
  }
  func.func @transform_2(%arg0: i32) -> (i32, i32) {
    %c0_i32 = arith.constant 0 : i32
    %c0_i32_0 = arith.constant 0 : i32
    %c0_i32_1 = arith.constant 0 : i32
    return %c0_i32, %c0_i32_0 : i32, i32
  }
  func.func @transform_3(%arg0: i32) -> (i32, i32) {
    %c0_i32 = arith.constant 0 : i32
    %c0_i32_0 = arith.constant 0 : i32
    %c0_i32_1 = arith.constant 0 : i32
    return %c0_i32, %c0_i32_0 : i32, i32
  }
  func.func @transform_4(%arg0: i32) -> (i32, i32) {
    %c0_i32 = arith.constant 0 : i32
    %c0_i32_0 = arith.constant 0 : i32
    %c0_i32_1 = arith.constant 0 : i32
    return %c0_i32, %c0_i32_0 : i32, i32
  }
  func.func @transform_5(%arg0: i32) -> (i32, i32) {
    %c0_i32 = arith.constant 0 : i32
    %c0_i32_0 = arith.constant 0 : i32
    %c0_i32_1 = arith.constant 0 : i32
    return %c0_i32, %c0_i32_0 : i32, i32
  }
  func.func @transform_6(%arg0: i32) -> (i32, i32) {
    %c0_i32 = arith.constant 0 : i32
    %c0_i32_0 = arith.constant 0 : i32
    %c0_i32_1 = arith.constant 0 : i32
    return %c0_i32, %c0_i32_0 : i32, i32
  }
  func.func @transform_7(%arg0: i32) -> (i32, i32) {
    %c0_i32 = arith.constant 0 : i32
    %c0_i32_0 = arith.constant 0 : i32
    %c0_i32_1 = arith.constant 0 : i32
    return %c0_i32, %c0_i32_0 : i32, i32
  }
  func.func @transform_8(%arg0: i32) -> (i32, i32) {
    %c0_i32 = arith.constant 0 : i32
    %c0_i32_0 = arith.constant 0 : i32
    %c0_i32_1 = arith.constant 0 : i32
    return %c0_i32, %c0_i32_0 : i32, i32
  }
  func.func @transform_9(%arg0: i32) -> (i32, i32) {
    %c0_i32 = arith.constant 0 : i32
    %c0_i32_0 = arith.constant 0 : i32
    %c0_i32_1 = arith.constant 0 : i32
    return %c0_i32, %c0_i32_0 : i32, i32
  }
  func.func @transform_10(%arg0: i32) -> (i32, i32) {
    %c0_i32 = arith.constant 0 : i32
    %c0_i32_0 = arith.constant 0 : i32
    %c0_i32_1 = arith.constant 0 : i32
    return %c0_i32, %c0_i32_0 : i32, i32
  }
  func.func @transform_11(%arg0: i32) -> (i32, i32) {
    %c0_i32 = arith.constant 0 : i32
    %c0_i32_0 = arith.constant 0 : i32
    %c0_i32_1 = arith.constant 0 : i32
    return %c0_i32, %c0_i32_0 : i32, i32
  }
  func.func @transform_12(%arg0: i32) -> (i32, i32) {
    %c0_i32 = arith.constant 0 : i32
    %c0_i32_0 = arith.constant 0 : i32
    return %arg0, %c0_i32 : i32, i32
  }
}

</mosaic_0001>

<bundles_post_ra>
// kernel: mhsa_block.1
= control target key start
LH: loop header
LB: loop body
LE: loop exit
PB: predicated region body
PF: predicated region fallthrough
CT: control target
= control target key end

     0   :  { %s4256_s0 = inlined_call_operand.vmem [shape: f32[32,32], index: 0, kind: input, shape index: {}]   ;;  %s4257_s1 = inlined_call_operand.vmem [shape: bf16[32,96], index: 1, kind: input, shape index: {}]   ;;  %s4258_s2 = inlined_call_operand.vmem [shape: bf16[32,32], index: 2, kind: input, shape index: {}]   ;;  %s4259_s3 = inlined_call_operand.vmem [shape: f32[1,32], index: 3, kind: input, shape index: {}]   ;;  %s4260_s4 = inlined_call_operand.vmem [shape: f32[1,32], index: 4, kind: input, shape index: {}]   ;;  %s4261_s5 = inlined_call_operand.vmem [shape: f32[1,32], index: 5, kind: input, shape index: {}]   ;;  %s4262_s6 = inlined_call_operand.vmem [shape: f32[1,32], index: 6, kind: input, shape index: {}]   ;;  %s4263_s7 = inlined_call_operand.vmem [shape: f32[1,32], index: 7, kind: input, shape index: {}]   ;;  %s4264_s8 = inlined_call_operand.vmem [shape: bf16[32,128], index: 8, kind: input, shape index: {}]   ;;  %s4265_s9 = inlined_call_operand.vmem [shape: f32[1,128], index: 9, kind: input, shape index: {}]   ;;  %s4266_s10 = inlined_call_operand.vmem [shape: bf16[128,32], index: 10, kind: input, shape index: {}]   ;;  %s4267_s11 = inlined_call_operand.vmem [shape: f32[1,32], index: 11, kind: input, shape index: {}]   ;;  %s4268_s12 = inlined_call_operand.hbm [shape: f32[32,32], index: 12, kind: output, shape index: {}]  }
   0x1   :  { %4270 = sst [smem:[#allocation5_spill]] %s4256_s0 }
   0x2   :  { %17 = vsyncpa [#allocation3], 0 }
   0x3   :  { %19 = vsyncpa [#allocation3 + $0x1], 0  ;;  %s3614_s21 = smov 0   ;;  %s3616_s22 = smov 0  }
   0x4   :  { %s3618_s23 = smov 0   ;;  %s3620_s24 = smov 0  }
   0x5 LB: > { %s3635_s25 = sadd.s32 4294967295, %s3527_s24   ;;  %s2854_s26 = sadd.s32 4294967294, %s3527_s24   ;;  %s3527_s24 = sphi %s3620_s24, %s4278_s24   ;;  %s3523_s23 = sphi %s3618_s23, %s4277_s23   ;;  %s3519_s22 = sphi %s3616_s22, %s4276_s22   ;;  %s3515_s21 = sphi %s3614_s21, %s4275_s21  }
   0x6   : > { %s3639_s27 = sadd.s32 1, %s3527_s24   ;;  %s289_s28 = sadd.s32 1, %s3523_s23 }
   0x7   : > { %s286_s29 = ssub.s32 %s3527_s24, %s3639_s27  ;;  %p299_p0 = scmp.ne.s32.totalorder %s3523_s23, %s3519_s22 }
   0x8   : > { %p287_p1 = scmp.eq.s32.totalorder %s286_s29, 0  ;;  %p300_p2 = scmp.eq.s32.totalorder %s3635_s25, 1 }
   0x9   : > { %p305_p3 = scmp.ne.s32.totalorder %s3519_s22, %s3515_s21  ;;  %p306_p4 = scmp.eq.s32.totalorder %s2854_s26, 1 }
   0xa   : > { %s3650_s30 = scalar_select %p287_p1, %s3523_s23, %s289_s28  }
   0xb   : > { %p3652_p5 = por %p300_p2, %p299_p0  ;;  %p3656_p6 = por %p306_p4, %p305_p3 }
   0xc   : > { %p2857_p7 = scmp.ge.s32.totalorder %s3527_s24, 1  ;;  %p366_p8 = scmp.lt.s32.totalorder %s3527_s24, 3 }
   0xe   : > { %p367_p9 = pnand %p2857_p7, %p366_p8 }
   0xf   : > { %s2859_s15 = sshll.u32 (!%p367_p9), %s3635_s25, 1  ;;  %vm420_vm0 = vcmask (!%p367_p9), 261120   ;;  %s4273_s0 = sld [smem:[#allocation5_spill]] (!%p367_p9)  ;;  %v3369_v14 = vld [vmem:[%s4257_s1] sm:$0xff] (!%p367_p9)   ;;  %v3529_v15 = vmov (!%p367_p9), 0.0   ;;  %v3370_v16 = vld [vmem:[%s4257_s1 + $0x8] sm:$0xff] (!%p367_p9)  }
  0x10   : > { %370 = sbr.rel (%p367_p9) target bundleno = 2644 (0xa54), region = 68  ;;  %p409_p10 = scmp.lt.s32.totalorder (!%p367_p9), %s2859_s15, 3  ;;  %3005 = vmatprep.subr.bf16.mxu0 (!%p367_p9), %v3529_v15  ;;  %3025 = vmatprep.subr.bf16.mxu1 (!%p367_p9), %v3529_v15  ;;  %vm3530_vm1 = vmmov (!%p367_p9), 0   ;;  %v2861_v25 = vld [vmem:[%s4260_s4] ss:$0 sm:$0xff] (!%p367_p9)  ;;  %vm588_vm2 = vcmask (!%p367_p9), 31744  }
  0x11   : > { %3006 = vmatpush3.bf16.msra.mxu0 (!%p367_p9), %v3369_v14  ;;  %3009 = vmatprep.mubr.msk.bf16.mxu0 (!%p367_p9), %vm3530_vm1, %v3529_v15  ;;  %v2862_v29 = vld [vmem:[%s4261_s5] ss:$0 sm:$0xff] (!%p367_p9)  ;;  %s3531_s20 = smov (!%p367_p9), 120   ;;  %s3532_s26 = smov (!%p367_p9), 124   ;;  %vm1552_vm3 = vcmask (!%p367_p9), 1043456   ;;  %vm1386_vm4 = vcmask (!%p367_p9), 64512  }
  0x12   : > { %3007 = vmatprep.subr.bf16.mxu0 (!%p367_p9), %v3529_v15  ;;  %3027 = vmatprep.mubr.msk.bf16.mxu1 (!%p367_p9), %vm3530_vm1, %v3529_v15  ;;  %s3533_s28 = smov (!%p367_p9), 116   ;;  %s3534_s29 = smov (!%p367_p9), 108   ;;  %vm2408_vm5 = vcmask (!%p367_p9), 97280   ;;  %vm2411_vm6 = vcmask (!%p367_p9), 130048   ;;  %vm2414_vm7 = vcmask (!%p367_p9), 162816   ;;  %vm2417_vm8 = vcmask (!%p367_p9), 195584  }
  0x13   : > { %s3537_s17 = smov (!%p367_p9), 104   ;;  %s3538_s18 = smov (!%p367_p9), 100   ;;  %vm2420_vm9 = vcmask (!%p367_p9), 228352  }
  0x15   : > { %3008 = vmatpush3.bf16.msra.mxu0 (!%p367_p9), %v3370_v16 }
  0x16   : > { %3013 = vmatprep.subr.bf16.mxu0 (!%p367_p9), %v3529_v15 }
  0x17   : > { %s4280_s15 = smov (!%p409_p10, %s2859_s15), 3 }
  0x18   : > { %s2860_s16 = sshll.u32 %s4280_s15, 3  ;;  %s3535_s15 = smov 112  }
  0x19   : > { %s3666_s19 = scalar_lea.vmem %s4273_s0, %s2860_s16  ;;  %s3536_s16 = smov 96  }
  0x1a   : > { %v416_v0 = vld [vmem:[%s3666_s19] sm:$0xff]  ;;  %v417_v1 = vld [vmem:[%s3666_s19 + $0x8] sm:$0xff] }
  0x1b   : > { %v421_v2 = vsel %vm420_vm0, %v416_v0, 0.0  ;;  %v424_v3 = vsel %vm420_vm0, %v417_v1, 0.0 }
  0x1c   : > { %422 = vadd.xlane.f32.xlu0 %v421_v2 }
  0x20   : > { %425 = vadd.xlane.f32.xlu0 %v424_v3 }
  0xa9   : > { %v423_v4 = vpop.xlane.xlu0 %422 }
  0xaa   : > { %v428_v5 = vmul.f32 0.03125, %v423_v4 }
  0xac   : > { %v430_v6 = vsub.f32 %v416_v0, %v428_v5 }
  0xad   : > { %v426_v7 = vpop.xlane.xlu0 %425 }
  0xae   : > { %v429_v8 = vmul.f32 0.03125, %v426_v7  ;;  %v432_v9 = vmul.f32 %v430_v6, %v430_v6 }
  0xb0   : > { %v431_v10 = vsub.f32 %v417_v1, %v429_v8  ;;  %v434_v11 = vsel %vm420_vm0, %v432_v9, 0.0 }
  0xb1   : > { %435 = vadd.xlane.f32.xlu1 %v434_v11 }
  0xb2   : > { %v433_v12 = vmul.f32 %v431_v10, %v431_v10 }
  0xb4   : > { %v437_v13 = vsel %vm420_vm0, %v433_v12, 0.0 }
  0xb5   : > { %438 = vadd.xlane.f32.xlu1 %v437_v13 }
 0x13e   : > { %v436_v17 = vpop.xlane.xlu1 %435 }
 0x13f   : > { %v440_v18 = vmul.f32 0.03125, %v436_v17 }
 0x141   : > { %v442_v19 = vadd.f32 1e-05, %v440_v18 }
 0x142   : > { %v439_v20 = vpop.xlane.xlu1 %438 }
 0x143   : > { %3383 = vrsqrt.f32 %v442_v19  ;;  %v441_v21 = vmul.f32 0.03125, %v439_v20 }
 0x145   : > { %v443_v22 = vadd.f32 1e-05, %v441_v21 }
 0x147   : > { %3385 = vrsqrt.f32 %v443_v22 }
 0x14d   : > { %v3384_v23 = vpop.eup %3383 }
 0x14e   : > { %v446_v24 = vmul.f32 %v3384_v23, %v430_v6 }
 0x150   : > { %v454_v28 = vmul.f32 %v2861_v25, %v446_v24 }
 0x151   : > { %v3386_v26 = vpop.eup %3385 }
 0x152   : > { %v447_v27 = vmul.f32 %v3386_v26, %v431_v10  ;;  %v462_v31 = vadd.f32 %v2862_v29, %v454_v28 }
 0x154   : > { %v455_v30 = vmul.f32 %v2861_v25, %v447_v27 }
 0x156   : > { %v463_v32 = vadd.f32 %v2862_v29, %v455_v30 }
 0x158   : > { %v468_v33 = vpack.c.bf16 %v463_v32, %v462_v31 }
 0x15a   : > { %3010 = vmatmul.mubr.msk.bf16.vlgmr.msra.gmra.mrb[0].mxu0 %vm420_vm0, %v468_v33 }
 0x15b   : > { %3015 = vmatprep.mubr.msk.bf16.mxu0 %vm3530_vm1, %v3529_v15 }
 0x22d   : > { %v518_v34 = vpop.f32.mrb[0].mxu0 }
 0x22e   : > { %v3011_v35 = vpop.f32.mrb[1].mxu0  ;;  %v3697_v39 = vpack.c.bf16 %v518_v34, %v518_v34 }
 0x22f   : > { %v521_v36 = vpop.f32.mrb[2].mxu0 }
 0x230   : > { %v3012_v37 = vpop.f32.mrb[3].mxu0  ;;  %v3304_v38 = vpack.i.bf16 %v521_v36, %v518_v34  ;;  %v3701_v40 = vpack.c.bf16 %v521_v36, %v521_v36 }
 0x232   : > { %3305 = vrot.lane.b32.xlu1 %v3304_v38, %s3531_s20  ;;  %3300 = vrot.lane.b32.xlu0 %v3304_v38, %s3532_s26  ;;  %s3539_s20 = smov 64   ;;  %s3540_s26 = smov 4  }
 0x236   : > { %3310 = vrot.lane.b32.xlu1 %v3304_v38, %s3533_s28  ;;  %3320 = vrot.lane.b32.xlu0 %v3304_v38, %s3534_s29  ;;  %s4269_s28 = smov 8   ;;  %s3542_s29 = smov 12  }
 0x23a   : > { %3315 = vrot.lane.b32.xlu1 %v3304_v38, %s3535_s15  ;;  %586 = vrot.lane.b32.xlu0 %v3697_v39, %s3536_s16  ;;  %s3543_s15 = smov 16  }
 0x23e   : > { %3325 = vrot.lane.b32.xlu1 %v3304_v38, %s3537_s17  ;;  %636 = vrot.lane.b32.xlu0 %v3701_v40, %s3536_s16 }
 0x242   : > { %3330 = vrot.lane.b32.xlu1 %v3304_v38, %s3538_s18  ;;  %s3544_s18 = smov 20  }
 0x2a4   : > { %v3306_v41 = vpop.permute.xlu1 %3305  ;;  %v3301_v42 = vpop.permute.xlu0 %3300 }
 0x2a5   : > { %v3303_v43 = vunpack.i.h.bf16 %v3301_v42  ;;  %v3302_v44 = vunpack.i.l.bf16 %v3301_v42  ;;  %v3308_v45 = vunpack.i.h.bf16 %v3306_v41  ;;  %v3307_v46 = vunpack.i.l.bf16 %v3306_v41 }
 0x2a7   : > { %v3705_v47 = vpack.c.bf16 %v3303_v43, %v3303_v43  ;;  %v3707_v48 = vpack.c.bf16 %v3302_v44, %v3302_v44  ;;  %v3713_v51 = vpack.c.bf16 %v3308_v45, %v3308_v45  ;;  %v3715_v52 = vpack.c.bf16 %v3307_v46, %v3307_v46 }
 0x2a8   : > { %v3311_v49 = vpop.permute.xlu1 %3310  ;;  %v3321_v50 = vpop.permute.xlu0 %3320 }
 0x2a9   : > { %685 = vrot.lane.b32.xlu1 %v3707_v48, %s3536_s16  ;;  %734 = vrot.lane.b32.xlu0 %v3705_v47, %s3536_s16  ;;  %v3313_v53 = vunpack.i.h.bf16 %v3311_v49  ;;  %v3312_v54 = vunpack.i.l.bf16 %v3311_v49  ;;  %v3322_v0 = vunpack.i.l.bf16 %v3321_v50  ;;  %v3323_v2 = vunpack.i.h.bf16 %v3321_v50 }
 0x2ab   : > { %v3722_v58 = vpack.c.bf16 %v3313_v53, %v3313_v53  ;;  %v3724_v59 = vpack.c.bf16 %v3312_v54, %v3312_v54  ;;  %v3742_v5 = vpack.c.bf16 %v3322_v0, %v3322_v0  ;;  %v3747_v7 = vpack.c.bf16 %v3323_v2, %v3323_v2 }
 0x2ac   : > { %v3316_v55 = vpop.permute.xlu1 %3315  ;;  %v587_v56 = vpop.permute.xlu0 %586 }
 0x2ad   : > { %v593_v57 = vsel %vm588_vm2, %v587_v56, 0  ;;  %783 = vrot.lane.b32.xlu1 %v3715_v52, %s3536_s16  ;;  %832 = vrot.lane.b32.xlu0 %v3713_v51, %s3536_s16  ;;  %v3317_v60 = vunpack.i.l.bf16 %v3316_v55  ;;  %v3318_v61 = vunpack.i.h.bf16 %v3316_v55 }
 0x2ae   : > { %3014 = vmatpush3.bf16.xpose.msra.mxu0 %v593_v57 }
 0x2af   : > { %3019 = vmatprep.subr.bf16.mxu0 %v3529_v15  ;;  %v3731_v1 = vpack.c.bf16 %v3317_v60, %v3317_v60  ;;  %v3733_v3 = vpack.c.bf16 %v3318_v61, %v3318_v61 }
 0x2b0   : > { %v3326_v62 = vpop.permute.xlu1 %3325  ;;  %v637_v63 = vpop.permute.xlu0 %636 }
 0x2b1   : > { %881 = vrot.lane.b32.xlu1 %v3724_v59, %s3536_s16  ;;  %930 = vrot.lane.b32.xlu0 %v3722_v58, %s3536_s16  ;;  %v642_v4 = vsel %vm588_vm2, %v637_v63, 0  ;;  %v3327_v6 = vunpack.i.l.bf16 %v3326_v62  ;;  %v3328_v8 = vunpack.i.h.bf16 %v3326_v62 }
 0x2b3   : > { %v3753_v10 = vpack.c.bf16 %v3327_v6, %v3327_v6  ;;  %v3755_v12 = vpack.c.bf16 %v3328_v8, %v3328_v8 }
 0x2b4   : > { %v3331_v9 = vpop.permute.xlu1 %3330 }
 0x2b5   : > { %3016 = vmatmul.mubr.msk.bf16.vlgmr.msra.gmra.mrb[4].mxu0 %vm588_vm2, %v3697_v39  ;;  %979 = vrot.lane.b32.xlu1 %v3731_v1, %s3536_s16  ;;  %v3332_v11 = vunpack.i.l.bf16 %v3331_v9  ;;  %v3333_v13 = vunpack.i.h.bf16 %v3331_v9 }
 0x2b6   : > { %1028 = vrot.lane.b32.xlu0 %v3733_v3, %s3536_s16  ;;  %3020 = vmatpush3.bf16.xpose.msra.mxu0 %v642_v4 }
 0x2b7   : > { %3021 = vmatprep.mubr.msk.bf16.mxu0 %vm3530_vm1, %v3529_v15  ;;  %3031 = vmatprep.subr.bf16.mxu0 %v3529_v15  ;;  %v3765_v14 = vpack.c.bf16 %v3332_v11, %v3332_v11  ;;  %v3767_v16 = vpack.c.bf16 %v3333_v13, %v3333_v13 }
 0x2b9   : > { %1077 = vrot.lane.b32.xlu1 %v3742_v5, %s3536_s16 }
 0x2ba   : > { %1126 = vrot.lane.b32.xlu0 %v3747_v7, %s3536_s16 }
 0x2bd   : > { %1175 = vrot.lane.b32.xlu1 %v3753_v10, %s3536_s16  ;;  %3022 = vmatmul.mubr.msk.bf16.vlgmr.msra.gmra.mrb[8].mxu0 %vm588_vm2, %v3701_v40 }
 0x2be   : > { %1224 = vrot.lane.b32.xlu0 %v3755_v12, %s3536_s16  ;;  %3033 = vmatprep.mubr.msk.bf16.mxu0 %vm3530_vm1, %v3529_v15 }
 0x2c1   : > { %1273 = vrot.lane.b32.xlu1 %v3765_v14, %s3536_s16 }
 0x2c2   : > { %1322 = vrot.lane.b32.xlu0 %v3767_v16, %s3536_s16  ;;  %s2922_s16 = sshll.u32 %s3635_s25, 8 }
 0x2c3   : > { %s4207_s0 = scalar_lea.hbm %s4268_s12, %s2922_s16 }
 0x2c5   : > { %1547 = vrot.lane.b32.xlu1 %v3697_v39, %s3539_s20 }
 0x2c6   : > { %1596 = vrot.lane.b32.xlu0 %v3701_v40, %s3539_s20 }
 0x2c9   : > { %1644 = vrot.lane.b32.xlu1 %v3707_v48, %s3539_s20 }
 0x2ca   : > { %1692 = vrot.lane.b32.xlu0 %v3705_v47, %s3539_s20 }
 0x2cd   : > { %1740 = vrot.lane.b32.xlu1 %v3715_v52, %s3539_s20 }
 0x2ce   : > { %1788 = vrot.lane.b32.xlu0 %v3713_v51, %s3539_s20 }
 0x2d1   : > { %1836 = vrot.lane.b32.xlu1 %v3724_v59, %s3539_s20 }
 0x2d2   : > { %1884 = vrot.lane.b32.xlu0 %v3722_v58, %s3539_s20 }
 0x2d5   : > { %1932 = vrot.lane.b32.xlu1 %v3731_v1, %s3539_s20 }
 0x2d6   : > { %1980 = vrot.lane.b32.xlu0 %v3733_v3, %s3539_s20 }
 0x2d9   : > { %2028 = vrot.lane.b32.xlu1 %v3742_v5, %s3539_s20 }
 0x2dd   : > { %2076 = vrot.lane.b32.xlu1 %v3747_v7, %s3539_s20 }
 0x31b   : > { %v686_v17 = vpop.permute.xlu1 %685  ;;  %v735_v18 = vpop.permute.xlu0 %734 }
 0x31c   : > { %v740_v19 = vsel %vm588_vm2, %v735_v18, 0  ;;  %v691_v20 = vsel %vm588_vm2, %v686_v17, 0 }
 0x31d   : > { %3026 = vmatpush3.bf16.xpose.msra.mxu1 %v691_v20  ;;  %3032 = vmatpush3.bf16.xpose.msra.mxu0 %v740_v19 }
 0x31e   : > { %3037 = vmatprep.subr.bf16.mxu1 %v3529_v15  ;;  %3043 = vmatprep.subr.bf16.mxu0 %v3529_v15 }
 0x31f   : > { %v784_v21 = vpop.permute.xlu1 %783  ;;  %v833_v22 = vpop.permute.xlu0 %832 }
 0x320   : > { %v789_v23 = vsel %vm588_vm2, %v784_v21, 0  ;;  %v838_v24 = vsel %vm588_vm2, %v833_v22, 0 }
 0x323   : > { %v882_v25 = vpop.permute.xlu1 %881  ;;  %v931_v26 = vpop.permute.xlu0 %930 }
 0x324   : > { %3028 = vmatmul.mubr.msk.bf16.vlgmr.msra.gmra.mrb[0].mxu1 %vm588_vm2, %v3707_v48  ;;  %3034 = vmatmul.mubr.msk.bf16.vlgmr.msra.gmra.mrb[12].mxu0 %vm588_vm2, %v3705_v47  ;;  %v887_v27 = vsel %vm588_vm2, %v882_v25, 0  ;;  %v936_v28 = vsel %vm588_vm2, %v931_v26, 0 }
 0x325   : > { %3038 = vmatpush3.bf16.xpose.msra.mxu1 %v789_v23  ;;  %3044 = vmatpush3.bf16.xpose.msra.mxu0 %v838_v24 }
 0x326   : > { %3039 = vmatprep.mubr.msk.bf16.mxu1 %vm3530_vm1, %v3529_v15  ;;  %3045 = vmatprep.mubr.msk.bf16.mxu0 %vm3530_vm1, %v3529_v15 }
 0x327   : > { %3049 = vmatprep.subr.bf16.mxu1 %v3529_v15  ;;  %3055 = vmatprep.subr.bf16.mxu0 %v3529_v15  ;;  %v980_v29 = vpop.permute.xlu1 %979 }
 0x328   : > { %v1029_v30 = vpop.permute.xlu0 %1028  ;;  %v985_v31 = vsel %vm588_vm2, %v980_v29, 0 }
 0x329   : > { %v1034_v32 = vsel %vm588_vm2, %v1029_v30, 0 }
 0x32b   : > { %v1078_v33 = vpop.permute.xlu1 %1077 }
 0x32c   : > { %3040 = vmatmul.mubr.msk.bf16.vlgmr.msra.gmra.mrb[4].mxu1 %vm588_vm2, %v3715_v52  ;;  %3046 = vmatmul.mubr.msk.bf16.vlgmr.msra.gmra.mrb[16].mxu0 %vm588_vm2, %v3713_v51  ;;  %v1127_v34 = vpop.permute.xlu0 %1126  ;;  %v1083_v35 = vsel %vm588_vm2, %v1078_v33, 0 }
 0x32d   : > { %3050 = vmatpush3.bf16.xpose.msra.mxu1 %v887_v27  ;;  %3056 = vmatpush3.bf16.xpose.msra.mxu0 %v936_v28  ;;  %v1132_v36 = vsel %vm588_vm2, %v1127_v34, 0 }
 0x32e   : > { %3051 = vmatprep.mubr.msk.bf16.mxu1 %vm3530_vm1, %v3529_v15  ;;  %3057 = vmatprep.mubr.msk.bf16.mxu0 %vm3530_vm1, %v3529_v15 }
 0x32f   : > { %3061 = vmatprep.subr.bf16.mxu1 %v3529_v15  ;;  %3067 = vmatprep.subr.bf16.mxu0 %v3529_v15  ;;  %v1176_v37 = vpop.permute.xlu1 %1175 }
 0x330   : > { %v1225_v38 = vpop.permute.xlu0 %1224  ;;  %v1181_v39 = vsel %vm588_vm2, %v1176_v37, 0 }
 0x331   : > { %v1230_v40 = vsel %vm588_vm2, %v1225_v38, 0 }
 0x333   : > { %v1274_v41 = vpop.permute.xlu1 %1273 }
 0x334   : > { %3052 = vmatmul.mubr.msk.bf16.vlgmr.msra.gmra.mrb[8].mxu1 %vm588_vm2, %v3724_v59  ;;  %3058 = vmatmul.mubr.msk.bf16.vlgmr.msra.gmra.mrb[20].mxu0 %vm588_vm2, %v3722_v58  ;;  %v1323_v42 = vpop.permute.xlu0 %1322  ;;  %v1279_v43 = vsel %vm588_vm2, %v1274_v41, 0 }
 0x335   : > { %3062 = vmatpush3.bf16.xpose.msra.mxu1 %v985_v31  ;;  %3068 = vmatpush3.bf16.xpose.msra.mxu0 %v1034_v32  ;;  %v1328_v44 = vsel %vm588_vm2, %v1323_v42, 0 }
 0x336   : > { %3063 = vmatprep.mubr.msk.bf16.mxu1 %vm3530_vm1, %v3529_v15  ;;  %3069 = vmatprep.mubr.msk.bf16.mxu0 %vm3530_vm1, %v3529_v15 }
 0x337   : > { %3073 = vmatprep.subr.bf16.mxu1 %v3529_v15  ;;  %3079 = vmatprep.subr.bf16.mxu0 %v3529_v15  ;;  %v1548_v45 = vpop.permute.xlu1 %1547 }
 0x338   : > { %v1597_v46 = vpop.permute.xlu0 %1596  ;;  %v1554_v47 = vsel %vm1552_vm3, %v1548_v45, 0 }
 0x339   : > { %v1602_v48 = vsel %vm1552_vm3, %v1597_v46, 0 }
 0x33b   : > { %v3893_v61 = vpop.permute.xlu1 %1644 }
 0x33c   : > { %3064 = vmatmul.mubr.msk.bf16.vlgmr.msra.gmra.mrb[12].mxu1 %vm588_vm2, %v3731_v1  ;;  %3070 = vmatmul.mubr.msk.bf16.vlgmr.msra.gmra.mrb[24].mxu0 %vm588_vm2, %v3733_v3  ;;  %v3915_v29 = vpop.permute.xlu0 %1692 }
 0x33d   : > { %3074 = vmatpush3.bf16.xpose.msra.mxu1 %v1083_v35  ;;  %3080 = vmatpush3.bf16.xpose.msra.mxu0 %v1132_v36 }
 0x33e   : > { %3075 = vmatprep.mubr.msk.bf16.mxu1 %vm3530_vm1, %v3529_v15  ;;  %3081 = vmatprep.mubr.msk.bf16.mxu0 %vm3530_vm1, %v3529_v15 }
 0x33f   : > { %3085 = vmatprep.subr.bf16.mxu1 %v3529_v15  ;;  %3091 = vmatprep.subr.bf16.mxu0 %v3529_v15  ;;  %v3895_v62 = vpop.permute.xlu1 %1740 }
 0x343   : > { %v3903_v11 = vpop.permute.xlu1 %1836 }
 0x344   : > { %3076 = vmatmul.mubr.msk.bf16.vlgmr.msra.gmra.mrb[16].mxu1 %vm588_vm2, %v3742_v5  ;;  %3082 = vmatmul.mubr.msk.bf16.vlgmr.msra.gmra.mrb[28].mxu0 %vm588_vm2, %v3747_v7 }
 0x345   : > { %3086 = vmatpush3.bf16.xpose.msra.mxu1 %v1181_v39  ;;  %3092 = vmatpush3.bf16.xpose.msra.mxu0 %v1230_v40 }
 0x346   : > { %3087 = vmatprep.mubr.msk.bf16.mxu1 %vm3530_vm1, %v3529_v15  ;;  %3093 = vmatprep.mubr.msk.bf16.mxu0 %vm3530_vm1, %v3529_v15 }
 0x347   : > { %3097 = vmatprep.subr.bf16.mxu1 %v3529_v15  ;;  %3103 = vmatprep.subr.bf16.mxu0 %v3529_v15  ;;  %v3917_v30 = vpop.permute.xlu1 %1932 }
 0x34c   : > { %3088 = vmatmul.mubr.msk.bf16.vlgmr.msra.gmra.mrb[20].mxu1 %vm588_vm2, %v3753_v10  ;;  %3094 = vmatmul.mubr.msk.bf16.vlgmr.msra.gmra.mrb[32].mxu0 %vm588_vm2, %v3755_v12 }
 0x34d   : > { %3098 = vmatpush3.bf16.xpose.msra.mxu1 %v1279_v43  ;;  %3104 = vmatpush3.bf16.xpose.msra.mxu0 %v1328_v44  ;;  %v3927_v43 = vpop.permute.xlu0 %1788  ;;  %v3929_v44 = vpop.permute.xlu1 %2028 }
 0x34e   : > { %3099 = vmatprep.mubr.msk.bf16.mxu1 %vm3530_vm1, %v3529_v15  ;;  %3105 = vmatprep.mubr.msk.bf16.mxu0 %vm3530_vm1, %v3529_v15 }
 0x34f   : > { %3109 = vmatprep.subr.bf16.mxu1 %v3529_v15  ;;  %3115 = vmatprep.subr.bf16.mxu0 %v3529_v15 }
 0x354   : > { %3100 = vmatmul.mubr.msk.bf16.vlgmr.msra.gmra.mrb[24].mxu1 %vm588_vm2, %v3765_v14  ;;  %3106 = vmatmul.mubr.msk.bf16.vlgmr.msra.gmra.mrb[36].mxu0 %vm588_vm2, %v3767_v16 }
 0x355   : > { %3110 = vmatpush3.bf16.msra.mxu1 %v1554_v47  ;;  %3116 = vmatpush3.bf16.msra.mxu0 %v1602_v48 }
 0x356   : > { %3111 = vmatprep.mubr.msk.bf16.mxu1 %vm3530_vm1, %v3529_v15  ;;  %3121 = vmatprep.subr.bf16.mxu1 %v3529_v15 }
 0x357   : > { %3117 = vmatprep.mubr.msk.bf16.mxu0 %vm3530_vm1, %v3529_v15  ;;  %3127 = vmatprep.subr.bf16.mxu0 %v3529_v15 }
 0x388   : > { %v629_v49 = vpop.f32.mrb[4].mxu0 }
 0x389   : > { %v3885_v50 = vmul.f32 0.5, %v629_v49  ;;  %v3017_v51 = vpop.f32.mrb[5].mxu0 }
 0x38a   : > { %v632_v52 = vpop.f32.mrb[6].mxu0 }
 0x38b   : > { %v3018_v53 = vpop.f32.mrb[7].mxu0  ;;  %v1387_v54 = vsel %vm1386_vm4, %v3885_v50, -inf }
 0x38c   : > { %1388 = vmax.xlane.f32.xlu1 %v1387_v54 }
 0x390   : > { %v678_v55 = vpop.f32.mrb[8].mxu0 }
 0x391   : > { %v3889_v56 = vmul.f32 0.5, %v678_v55  ;;  %v3023_v57 = vpop.f32.mrb[9].mxu0 }
 0x392   : > { %v681_v58 = vpop.f32.mrb[10].mxu0 }
 0x393   : > { %v3024_v59 = vpop.f32.mrb[11].mxu0  ;;  %v1390_v60 = vsel %vm1386_vm4, %v3889_v56, -inf }
 0x394   : > { %1391 = vmax.xlane.f32.xlu0 %v1390_v60  ;;  %v3939_v59 = vpop.permute.xlu1 %2076  ;;  %v3941_v60 = vpop.permute.xlu0 %1884 }
 0x3f7   : > { %v727_v63 = vpop.f32.mrb[0].mxu1  ;;  %v776_v0 = vpop.f32.mrb[12].mxu0 }
 0x3f8   : > { %v3897_v1 = vmul.f32 0.5, %v727_v63  ;;  %v3029_v2 = vpop.f32.mrb[1].mxu1  ;;  %v3035_v3 = vpop.f32.mrb[13].mxu0  ;;  %v3899_v6 = vmul.f32 0.5, %v776_v0 }
 0x3f9   : > { %v730_v4 = vpop.f32.mrb[2].mxu1  ;;  %v779_v5 = vpop.f32.mrb[14].mxu0 }
 0x3fa   : > { %v3030_v7 = vpop.f32.mrb[3].mxu1  ;;  %v3036_v8 = vpop.f32.mrb[15].mxu0  ;;  %v1393_v9 = vsel %vm1386_vm4, %v3897_v1, -inf  ;;  %v1396_v13 = vsel %vm1386_vm4, %v3899_v6, -inf }
 0x3fb   : > { %1394 = vmax.xlane.f32.xlu0 %v1393_v9 }
 0x3ff   : > { %v825_v17 = vpop.f32.mrb[4].mxu1  ;;  %1397 = vmax.xlane.f32.xlu0 %v1396_v13  ;;  %v874_v18 = vpop.f32.mrb[16].mxu0 }
 0x400   : > { %v3907_v19 = vmul.f32 0.5, %v825_v17  ;;  %v3909_v20 = vmul.f32 0.5, %v874_v18  ;;  %v3041_v21 = vpop.f32.mrb[5].mxu1  ;;  %v3047_v22 = vpop.f32.mrb[17].mxu0 }
 0x401   : > { %v828_v23 = vpop.f32.mrb[6].mxu1  ;;  %v877_v24 = vpop.f32.mrb[18].mxu0 }
 0x402   : > { %v3042_v25 = vpop.f32.mrb[7].mxu1  ;;  %v3048_v26 = vpop.f32.mrb[19].mxu0  ;;  %v1399_v27 = vsel %vm1386_vm4, %v3907_v19, -inf  ;;  %v1402_v28 = vsel %vm1386_vm4, %v3909_v20, -inf }
 0x403   : > { %1400 = vmax.xlane.f32.xlu1 %v1399_v27  ;;  %1403 = vmax.xlane.f32.xlu0 %v1402_v28  ;;  %v3948_v22 = vpop.permute.xlu0 %1980 }
 0x407   : > { %v923_v31 = vpop.f32.mrb[8].mxu1  ;;  %v972_v32 = vpop.f32.mrb[20].mxu0 }
 0x408   : > { %v3919_v33 = vmul.f32 0.5, %v923_v31  ;;  %v3921_v34 = vmul.f32 0.5, %v972_v32  ;;  %v3053_v35 = vpop.f32.mrb[9].mxu1  ;;  %v3059_v36 = vpop.f32.mrb[21].mxu0 }
 0x409   : > { %v926_v37 = vpop.f32.mrb[10].mxu1  ;;  %v975_v38 = vpop.f32.mrb[22].mxu0 }
 0x40a   : > { %v3054_v39 = vpop.f32.mrb[11].mxu1  ;;  %v3060_v40 = vpop.f32.mrb[23].mxu0  ;;  %v1405_v41 = vsel %vm1386_vm4, %v3919_v33, -inf  ;;  %v1408_v42 = vsel %vm1386_vm4, %v3921_v34, -inf }
 0x40b   : > { %1406 = vmax.xlane.f32.xlu1 %v1405_v41  ;;  %1409 = vmax.xlane.f32.xlu0 %v1408_v42 }
 0x40f   : > { %v1021_v45 = vpop.f32.mrb[12].mxu1  ;;  %v1070_v46 = vpop.f32.mrb[24].mxu0 }
 0x410   : > { %v3931_v47 = vmul.f32 0.5, %v1021_v45  ;;  %v3933_v48 = vmul.f32 0.5, %v1070_v46  ;;  %v3065_v49 = vpop.f32.mrb[13].mxu1  ;;  %v3071_v51 = vpop.f32.mrb[25].mxu0 }
 0x411   : > { %v1024_v52 = vpop.f32.mrb[14].mxu1  ;;  %v1073_v53 = vpop.f32.mrb[26].mxu0  ;;  %v1650_v51 = vsel %vm1552_vm3, %v3893_v61, 0 }
 0x412   : > { %v3066_v54 = vpop.f32.mrb[15].mxu1  ;;  %v3072_v55 = vpop.f32.mrb[27].mxu0  ;;  %v1411_v57 = vsel %vm1386_vm4, %v3931_v47, -inf  ;;  %v1414_v58 = vsel %vm1386_vm4, %v3933_v48, -inf  ;;  %v1698_v53 = vsel %vm1552_vm3, %v3915_v29, 0 }
 0x413   : > { %1412 = vmax.xlane.f32.xlu1 %v1411_v57  ;;  %1415 = vmax.xlane.f32.xlu0 %v1414_v58 }
 0x417   : > { %v1119_v63 = vpop.f32.mrb[16].mxu1  ;;  %v1168_v0 = vpop.f32.mrb[28].mxu0 }
 0x418   : > { %v3943_v2 = vmul.f32 0.5, %v1168_v0  ;;  %v3077_v3 = vpop.f32.mrb[17].mxu1  ;;  %v3083_v4 = vpop.f32.mrb[29].mxu0  ;;  %v3975_v61 = vmul.f32 0.5, %v1119_v63 }
 0x419   : > { %v1122_v5 = vpop.f32.mrb[18].mxu1  ;;  %v1389_v7 = vpop.xlane.xlu1 %1388 }
 0x41a   : > { %v1435_v8 = vsub.f32 %v3885_v50, %v1389_v7  ;;  %v1171_v9 = vpop.f32.mrb[30].mxu0  ;;  %v3078_v13 = vpop.f32.mrb[19].mxu1  ;;  %v1420_v17 = vsel %vm1386_vm4, %v3943_v2, -inf }
 0x41b   : > { %v3084_v18 = vpop.f32.mrb[31].mxu0  ;;  %1421 = vmax.xlane.f32.xlu0 %v1420_v17 }
 0x41c   : > { %v1451_v21 = vmul.f32 1.442695, %v1435_v8 }
 0x41e   : > { %3387 = vpow2.f32 %v1451_v21 }
 0x41f   : > { %v1217_v23 = vpop.f32.mrb[20].mxu1  ;;  %v1266_v24 = vpop.f32.mrb[32].mxu0 }
 0x420   : > { %v3089_v25 = vpop.f32.mrb[21].mxu1  ;;  %v3095_v26 = vpop.f32.mrb[33].mxu0  ;;  %v3977_v54 = vmul.f32 0.5, %v1217_v23  ;;  %v3981_v55 = vmul.f32 0.5, %v1266_v24 }
 0x421   : > { %v1220_v27 = vpop.f32.mrb[22].mxu1  ;;  %v1392_v28 = vpop.xlane.xlu0 %1391 }
 0x422   : > { %v1436_v31 = vsub.f32 %v3889_v56, %v1392_v28  ;;  %v1269_v50 = vpop.f32.mrb[34].mxu0  ;;  %v3090_v32 = vpop.f32.mrb[23].mxu1  ;;  %v1423_v29 = vsel %vm1386_vm4, %v3977_v54, -inf  ;;  %v1426_v0 = vsel %vm1386_vm4, %v3981_v55, -inf }
 0x423   : > { %v3096_v35 = vpop.f32.mrb[35].mxu0 }
 0x424   : > { %v1453_v36 = vmul.f32 1.442695, %v1436_v31  ;;  %2124 = vrot.lane.b32.xlu1 %v3753_v10, %s3539_s20 }
 0x426   : > { %3389 = vpow2.f32 %v1453_v36 }
 0x427   : > { %v1315_v37 = vpop.f32.mrb[24].mxu1  ;;  %v1364_v38 = vpop.f32.mrb[36].mxu0 }
 0x428   : > { %v3953_v39 = vpop.eup %3387  ;;  %v3101_v40 = vpop.f32.mrb[25].mxu1  ;;  %v3983_v57 = vmul.f32 0.5, %v1315_v37  ;;  %v3987_v58 = vmul.f32 0.5, %v1364_v38 }
 0x429   : > { %v3107_v41 = vpop.f32.mrb[37].mxu0  ;;  %v1318_v42 = vpop.f32.mrb[26].mxu1  ;;  %v1531_v46 = vpack.c.bf16 %v3953_v39, %v3953_v39 }
 0x42a   : > { %v1367_v45 = vpop.f32.mrb[38].mxu0  ;;  %v3102_v56 = vpop.f32.mrb[27].mxu1  ;;  %v1429_v63 = vsel %vm1386_vm4, %v3983_v57, -inf  ;;  %v1432_v3 = vsel %vm1386_vm4, %v3987_v58, -inf  ;;  %v1842_v42 = vsel %vm1552_vm3, %v3903_v11, 0 }
 0x42b   : > { %v3108_v49 = vpop.f32.mrb[39].mxu0  ;;  %3112 = vmatmul.mubr.msk.bf16.vlgmr.msra.gmra.mrb[28].mxu1 %vm1386_vm4, %v1531_v46 }
 0x42c   : > { %3122 = vmatpush3.bf16.msra.mxu1 %v1650_v51  ;;  %3123 = vmatprep.mubr.msk.bf16.mxu1 %vm3530_vm1, %v3529_v15 }
 0x42d   : > { %3133 = vmatprep.subr.bf16.mxu1 %v3529_v15 }
 0x430   : > { %v3963_v10 = vpop.eup %3389 }
 0x431   : > { %2172 = vrot.lane.b32.xlu0 %v3755_v12, %s3539_s20  ;;  %v1532_v52 = vpack.c.bf16 %v3963_v10, %v3963_v10  ;;  %v1417_v12 = vsel %vm1386_vm4, %v3975_v61, -inf }
 0x433   : > { %3118 = vmatmul.mubr.msk.bf16.vlgmr.msra.gmra.mrb[40].mxu0 %vm1386_vm4, %v1532_v52 }
 0x434   : > { %3128 = vmatpush3.bf16.msra.mxu0 %v1698_v53  ;;  %3129 = vmatprep.mubr.msk.bf16.mxu0 %vm3530_vm1, %v3529_v15 }
 0x435   : > { %3139 = vmatprep.subr.bf16.mxu0 %v3529_v15 }
 0x448   : > { %1418 = vmax.xlane.f32.xlu1 %v1417_v12 }
 0x44c   : > { %1424 = vmax.xlane.f32.xlu1 %v1423_v29  ;;  %v1938_v29 = vsel %vm1552_vm3, %v3917_v30, 0 }
 0x450   : > { %1430 = vmax.xlane.f32.xlu1 %v1429_v63  ;;  %1427 = vmax.xlane.f32.xlu0 %v1426_v0 }
 0x454   : > { %1433 = vmax.xlane.f32.xlu0 %v1432_v3 }
 0x461   : > { %2220 = vrot.lane.b32.xlu1 %v3765_v14, %s3539_s20 }
 0x46a   : > { %2268 = vrot.lane.b32.xlu0 %v3767_v16, %s3539_s20  ;;  %s405_s20 = sand.u32 1, %s3519_s22  }
 0x46b   : > { %s4214_s25 = scalar_lea.sflag [#allocation3], %s405_s20 }
 0x488   : > { %v1395_v4 = vpop.xlane.xlu0 %1394 }
 0x489   : > { %v1437_v5 = vsub.f32 %v3897_v1, %v1395_v4 }
 0x48b   : > { %v1455_v7 = vmul.f32 1.442695, %v1437_v5 }
 0x48c   : > { %v1398_v8 = vpop.xlane.xlu0 %1397 }
 0x48d   : > { %3391 = vpow2.f32 %v1455_v7  ;;  %v1438_v9 = vsub.f32 %v3899_v6, %v1398_v8  ;;  %v2034_v8 = vsel %vm1552_vm3, %v3929_v44, 0 }
 0x48f   : > { %v1457_v13 = vmul.f32 1.442695, %v1438_v9  ;;  %v2082_v9 = vsel %vm1552_vm3, %v3939_v59, 0 }
 0x490   : > { %v1401_v17 = vpop.xlane.xlu1 %1400  ;;  %v1404_v18 = vpop.xlane.xlu0 %1403 }
 0x491   : > { %3393 = vpow2.f32 %v1457_v13  ;;  %v1439_v21 = vsub.f32 %v3907_v19, %v1401_v17  ;;  %v1440_v23 = vsub.f32 %v3909_v20, %v1404_v18  ;;  %v1746_v19 = vsel %vm1552_vm3, %v3895_v62, 0 }
 0x493   : > { %v1459_v14 = vmul.f32 1.442695, %v1439_v21  ;;  %v1461_v24 = vmul.f32 1.442695, %v1440_v23 }
 0x495   : > { %3395 = vpow2.f32 %v1459_v14 }
 0x496   : > { %3397 = vpow2.f32 %v1461_v24 }
 0x497   : > { %v3392_v16 = vpop.eup %3391 }
 0x498   : > { %v1407_v25 = vpop.xlane.xlu1 %1406  ;;  %v1410_v1 = vpop.xlane.xlu0 %1409  ;;  %v1489_v26 = vsel %vm1386_vm4, %v3392_v16, 0.0  ;;  %v1533_v27 = vpack.c.bf16 %v3392_v16, %v3392_v16 }
 0x499   : > { %v1441_v6 = vsub.f32 %v3919_v33, %v1407_v25  ;;  %v1442_v28 = vsub.f32 %v3921_v34, %v1410_v1  ;;  %1490 = vadd.xlane.f32.xlu1 %v1489_v26  ;;  %v1794_v33 = vsel %vm1552_vm3, %v3927_v43, 0 }
 0x49a   : > { %3124 = vmatmul.mubr.msk.bf16.vlgmr.msra.gmra.mrb[32].mxu1 %vm1386_vm4, %v1533_v27 }
 0x49b   : > { %v3394_v20 = vpop.eup %3393  ;;  %v1463_v31 = vmul.f32 1.442695, %v1441_v6  ;;  %v1465_v50 = vmul.f32 1.442695, %v1442_v28  ;;  %3134 = vmatpush3.bf16.msra.mxu1 %v1746_v19  ;;  %3135 = vmatprep.mubr.msk.bf16.mxu1 %vm3530_vm1, %v3529_v15 }
 0x49c   : > { %v1492_v32 = vsel %vm1386_vm4, %v3394_v20, 0.0  ;;  %v1534_v35 = vpack.c.bf16 %v3394_v20, %v3394_v20  ;;  %3145 = vmatprep.subr.bf16.mxu1 %v3529_v15 }
 0x49d   : > { %3399 = vpow2.f32 %v1463_v31  ;;  %1493 = vadd.xlane.f32.xlu0 %v1492_v32 }
 0x49e   : > { %3401 = vpow2.f32 %v1465_v50  ;;  %3130 = vmatmul.mubr.msk.bf16.vlgmr.msra.gmra.mrb[44].mxu0 %vm1386_vm4, %v1534_v35 }
 0x49f   : > { %v3396_v62 = vpop.eup %3395  ;;  %3140 = vmatpush3.bf16.msra.mxu0 %v1794_v33  ;;  %3141 = vmatprep.mubr.msk.bf16.mxu0 %vm3530_vm1, %v3529_v15 }
 0x4a0   : > { %v1413_v34 = vpop.xlane.xlu1 %1412  ;;  %v1416_v36 = vpop.xlane.xlu0 %1415  ;;  %v1495_v37 = vsel %vm1386_vm4, %v3396_v62, 0.0  ;;  %v1535_v38 = vpack.c.bf16 %v3396_v62, %v3396_v62  ;;  %3151 = vmatprep.subr.bf16.mxu0 %v3529_v15 }
 0x4a1   : > { %v3398_v40 = vpop.eup %3397  ;;  %v1443_v41 = vsub.f32 %v3931_v47, %v1413_v34  ;;  %v1444_v43 = vsub.f32 %v3933_v48, %v1416_v36  ;;  %1496 = vadd.xlane.f32.xlu0 %v1495_v37  ;;  %v1890_v47 = vsel %vm1552_vm3, %v3941_v60, 0 }
 0x4a2   : > { %3136 = vmatmul.mubr.msk.bf16.vlgmr.msra.gmra.mrb[36].mxu1 %vm1386_vm4, %v1535_v38  ;;  %v1498_v56 = vsel %vm1386_vm4, %v3398_v40, 0.0  ;;  %v1536_v49 = vpack.c.bf16 %v3398_v40, %v3398_v40 }
 0x4a3   : > { %v1467_v45 = vmul.f32 1.442695, %v1443_v41  ;;  %v1469_v46 = vmul.f32 1.442695, %v1444_v43  ;;  %3146 = vmatpush3.bf16.msra.mxu1 %v1842_v42  ;;  %3147 = vmatprep.mubr.msk.bf16.mxu1 %vm3530_vm1, %v3529_v15 }
 0x4a4   : > { %3157 = vmatprep.subr.bf16.mxu1 %v3529_v15  ;;  %v2125_v59 = vpop.permute.xlu1 %2124 }
 0x4a5   : > { %3403 = vpow2.f32 %v1467_v45  ;;  %1499 = vadd.xlane.f32.xlu0 %v1498_v56  ;;  %v2130_v33 = vsel %vm1552_vm3, %v2125_v59, 0 }
 0x4a6   : > { %3405 = vpow2.f32 %v1469_v46  ;;  %3142 = vmatmul.mubr.msk.bf16.vlgmr.msra.gmra.mrb[48].mxu0 %vm1386_vm4, %v1536_v49  ;;  %v1483_v46 = vsel %vm1386_vm4, %v3953_v39, 0.0 }
 0x4a7   : > { %v3400_v11 = vpop.eup %3399  ;;  %3152 = vmatpush3.bf16.msra.mxu0 %v1890_v47  ;;  %3153 = vmatprep.mubr.msk.bf16.mxu0 %vm3530_vm1, %v3529_v15  ;;  %v1486_v47 = vsel %vm1386_vm4, %v3963_v10, 0.0 }
 0x4a8   : > { %v3402_v48 = vpop.eup %3401  ;;  %v1422_v51 = vpop.xlane.xlu0 %1421  ;;  %v1501_v52 = vsel %vm1386_vm4, %v3400_v11, 0.0  ;;  %v1537_v53 = vpack.c.bf16 %v3400_v11, %v3400_v11  ;;  %3163 = vmatprep.subr.bf16.mxu0 %v3529_v15 }
 0x4a9   : > { %v1446_v12 = vsub.f32 %v3943_v2, %v1422_v51  ;;  %1502 = vadd.xlane.f32.xlu1 %v1501_v52  ;;  %v1504_v60 = vsel %vm1386_vm4, %v3402_v48, 0.0  ;;  %v1538_v0 = vpack.c.bf16 %v3402_v48, %v3402_v48  ;;  %v1986_v2 = vsel %vm1552_vm3, %v3948_v22, 0 }
 0x4aa   : > { %1505 = vadd.xlane.f32.xlu0 %v1504_v60  ;;  %3148 = vmatmul.mubr.msk.bf16.vlgmr.msra.gmra.mrb[40].mxu1 %vm1386_vm4, %v1537_v53 }
 0x4ab   : > { %v1473_v63 = vmul.f32 1.442695, %v1446_v12  ;;  %3158 = vmatpush3.bf16.msra.mxu1 %v1938_v29  ;;  %3159 = vmatprep.mubr.msk.bf16.mxu1 %vm3530_vm1, %v3529_v15 }
 0x4ac   : > { %3169 = vmatprep.subr.bf16.mxu1 %v3529_v15  ;;  %v2173_v17 = vpop.permute.xlu0 %2172 }
 0x4ad   : > { %3407 = vpow2.f32 %v1473_v63  ;;  %v2178_v21 = vsel %vm1552_vm3, %v2173_v17, 0 }
 0x4ae   : > { %3154 = vmatmul.mubr.msk.bf16.vlgmr.msra.gmra.mrb[52].mxu0 %vm1386_vm4, %v1538_v0 }
 0x4af   : > { %v3404_v3 = vpop.eup %3403  ;;  %3164 = vmatpush3.bf16.msra.mxu0 %v1986_v2  ;;  %3165 = vmatprep.mubr.msk.bf16.mxu0 %vm3530_vm1, %v3529_v15 }
 0x4b0   : > { %v3406_v30 = vpop.eup %3405  ;;  %v1507_v4 = vsel %vm1386_vm4, %v3404_v3, 0.0  ;;  %v1539_v5 = vpack.c.bf16 %v3404_v3, %v3404_v3  ;;  %3175 = vmatprep.subr.bf16.mxu0 %v3529_v15 }
 0x4b1   : > { %1508 = vadd.xlane.f32.xlu1 %v1507_v4  ;;  %v1510_v7 = vsel %vm1386_vm4, %v3406_v30, 0.0  ;;  %v1540_v22 = vpack.c.bf16 %v3406_v30, %v3406_v30 }
 0x4b2   : > { %1511 = vadd.xlane.f32.xlu0 %v1510_v7  ;;  %3160 = vmatmul.mubr.msk.bf16.vlgmr.msra.gmra.mrb[44].mxu1 %vm1386_vm4, %v1539_v5 }
 0x4b3   : > { %3170 = vmatpush3.bf16.msra.mxu1 %v2034_v8  ;;  %3171 = vmatprep.mubr.msk.bf16.mxu1 %vm3530_vm1, %v3529_v15 }
 0x4b4   : > { %3181 = vmatprep.subr.bf16.mxu1 %v3529_v15 }
 0x4b6   : > { %3166 = vmatmul.mubr.msk.bf16.vlgmr.msra.gmra.mrb[56].mxu0 %vm1386_vm4, %v1540_v22 }
 0x4b7   : > { %v3408_v13 = vpop.eup %3407  ;;  %3176 = vmatpush3.bf16.msra.mxu0 %v2082_v9  ;;  %3177 = vmatprep.mubr.msk.bf16.mxu0 %vm3530_vm1, %v3529_v15 }
 0x4b8   : > { %v1516_v44 = vsel %vm1386_vm4, %v3408_v13, 0.0  ;;  %3187 = vmatprep.subr.bf16.mxu0 %v3529_v15  ;;  %v1542_v18 = vpack.c.bf16 %v3408_v13, %v3408_v13 }
 0x4b9   : > { %1517 = vadd.xlane.f32.xlu0 %v1516_v44 }
 0x4be   : > { %3178 = vmatmul.mubr.msk.bf16.vlgmr.msra.gmra.mrb[60].mxu0 %vm1386_vm4, %v1542_v18 }
 0x4bf   : > { %3188 = vmatpush3.bf16.msra.mxu0 %v2178_v21  ;;  %3189 = vmatprep.mubr.msk.bf16.mxu0 %vm3530_vm1, %v3529_v15 }
 0x4c0   : > { %3199 = vmatprep.subr.bf16.mxu0 %v3529_v15 }
 0x4d5   : > { %v1419_v23 = vpop.xlane.xlu1 %1418 }
 0x4d6   : > { %v1445_v14 = vsub.f32 %v3975_v61, %v1419_v23 }
 0x4d8   : > { %v1471_v24 = vmul.f32 1.442695, %v1445_v14 }
 0x4d9   : > { %v1425_v16 = vpop.xlane.xlu1 %1424 }
 0x4da   : > { %3409 = vpow2.f32 %v1471_v24  ;;  %v1447_v25 = vsub.f32 %v3977_v54, %v1425_v16 }
 0x4dc   : > { %v1475_v1 = vmul.f32 1.442695, %v1447_v25 }
 0x4dd   : > { %v1431_v26 = vpop.xlane.xlu1 %1430  ;;  %v1428_v27 = vpop.xlane.xlu0 %1427 }
 0x4de   : > { %3411 = vpow2.f32 %v1475_v1  ;;  %v1449_v6 = vsub.f32 %v3983_v57, %v1431_v26  ;;  %v1448_v28 = vsub.f32 %v3981_v55, %v1428_v27 }
 0x4e0   : > { %v1479_v19 = vmul.f32 1.442695, %v1449_v6  ;;  %v1477_v20 = vmul.f32 1.442695, %v1448_v28 }
 0x4e1   : > { %v1434_v31 = vpop.xlane.xlu0 %1433  ;;  %v2221_v62 = vpop.permute.xlu1 %2220 }
 0x4e2   : > { %3413 = vpow2.f32 %v1479_v19  ;;  %v1450_v50 = vsub.f32 %v3987_v58, %v1434_v31  ;;  %v2226_v43 = vsel %vm1552_vm3, %v2221_v62, 0 }
 0x4e3   : > { %3415 = vpow2.f32 %v1477_v20 }
 0x4e4   : > { %v3410_v61 = vpop.eup %3409  ;;  %v1481_v32 = vmul.f32 1.442695, %v1450_v50 }
 0x4e5   : > { %v1513_v35 = vsel %vm1386_vm4, %v3410_v61, 0.0  ;;  %v1541_v54 = vpack.c.bf16 %v3410_v61, %v3410_v61  ;;  %v2269_v36 = vpop.permute.xlu0 %2268 }
 0x4e6   : > { %3417 = vpow2.f32 %v1481_v32  ;;  %1514 = vadd.xlane.f32.xlu1 %v1513_v35  ;;  %v2274_v45 = vsel %vm1552_vm3, %v2269_v36, 0 }
 0x4e7   : > { %3172 = vmatmul.mubr.msk.bf16.vlgmr.msra.gmra.mrb[48].mxu1 %vm1386_vm4, %v1541_v54 }
 0x4e8   : > { %v3412_v57 = vpop.eup %3411  ;;  %3182 = vmatpush3.bf16.msra.mxu1 %v2130_v33  ;;  %3183 = vmatprep.mubr.msk.bf16.mxu1 %vm3530_vm1, %v3529_v15 }
 0x4e9   : > { %v1519_v55 = vsel %vm1386_vm4, %v3412_v57, 0.0  ;;  %3193 = vmatprep.subr.bf16.mxu1 %v3529_v15  ;;  %v1543_v38 = vpack.c.bf16 %v3412_v57, %v3412_v57 }
 0x4ea   : > { %1520 = vadd.xlane.f32.xlu1 %v1519_v55 }
 0x4ec   : > { %v3414_v58 = vpop.eup %3413 }
 0x4ed   : > { %v3416_v34 = vpop.eup %3415  ;;  %v1525_v37 = vsel %vm1386_vm4, %v3414_v58, 0.0  ;;  %v1545_v49 = vpack.c.bf16 %v3414_v58, %v3414_v58 }
 0x4ee   : > { %1526 = vadd.xlane.f32.xlu1 %v1525_v37  ;;  %v1522_v40 = vsel %vm1386_vm4, %v3416_v34, 0.0  ;;  %v1544_v41 = vpack.c.bf16 %v3416_v34, %v3416_v34 }
 0x4ef   : > { %1523 = vadd.xlane.f32.xlu0 %v1522_v40  ;;  %3184 = vmatmul.mubr.msk.bf16.vlgmr.msra.gmra.mrb[52].mxu1 %vm1386_vm4, %v1543_v38 }
 0x4f0   : > { %v3418_v42 = vpop.eup %3417  ;;  %3190 = vmatmul.mubr.msk.bf16.vlgmr.msra.gmra.mrb[64].mxu0 %vm1386_vm4, %v1544_v41  ;;  %3194 = vmatpush3.bf16.msra.mxu1 %v2226_v43 }
 0x4f1   : > { %3200 = vmatpush3.bf16.msra.mxu0 %v2274_v45  ;;  %v1528_v56 = vsel %vm1386_vm4, %v3418_v42, 0.0  ;;  %3195 = vmatprep.mubr.msk.bf16.mxu1 %vm3530_vm1, %v3529_v15  ;;  %v1546_v11 = vpack.c.bf16 %v3418_v42, %v3418_v42 }
 0x4f2   : > { %1484 = vadd.xlane.f32.xlu1 %v1483_v46  ;;  %3201 = vmatprep.mubr.msk.bf16.mxu0 %vm3530_vm1, %v3529_v15 }
 0x4f3   : > { %1529 = vadd.xlane.f32.xlu0 %v1528_v56  ;;  %3205 = vmatprep.subr.bf16.mxu1 %v3529_v15 }
 0x4f4   : > { %3213 = vmatprep.subr.bf16.mxu0 %v3529_v15 }
 0x4f7   : > { %1487 = vadd.xlane.f32.xlu0 %v1486_v47  ;;  %3196 = vmatmul.mubr.msk.bf16.vlgmr.msra.gmra.mrb[56].mxu1 %vm1386_vm4, %v1545_v49 }
 0x4f8   : > { %3202 = vmatmul.mubr.msk.bf16.vlgmr.msra.gmra.mrb[68].mxu0 %vm1386_vm4, %v1546_v11  ;;  %3209 = vmatprep.mubr.msk.bf16.mxu1 %vm3530_vm1, %v3529_v15 }
 0x4f9   : > { %3217 = vmatprep.mubr.msk.bf16.mxu0 %vm3530_vm1, %v3529_v15 }
 0x4fe   : > { %v4105_v39 = vpop.f32.mrb[28].mxu1 }
 0x4ff   : > { %v3113_v48 = vpop.f32.mrb[29].mxu1 }
 0x500   : > { %v1593_v51 = vpop.f32.mrb[30].mxu1 }
 0x501   : > { %v3114_v52 = vpop.f32.mrb[31].mxu1 }
 0x506   : > { %v4107_v53 = vpop.f32.mrb[40].mxu0 }
 0x507   : > { %v3119_v10 = vpop.f32.mrb[41].mxu0 }
 0x508   : > { %v1641_v12 = vpop.f32.mrb[42].mxu0 }
 0x509   : > { %v3120_v60 = vpop.f32.mrb[43].mxu0 }
 0x526   : > { %v1491_v63 = vpop.xlane.xlu1 %1490 }
 0x527   : > { %3419 = vrcp.f32 %v1491_v63 }
 0x52a   : > { %v1494_v29 = vpop.xlane.xlu0 %1493 }
 0x52b   : > { %3421 = vrcp.f32 %v1494_v29 }
 0x52e   : > { %v1497_v0 = vpop.xlane.xlu0 %1496 }
 0x52f   : > { %3423 = vrcp.f32 %v1497_v0 }
 0x531   : > { %v3420_v5 = vpop.eup %3419 }
 0x532   : > { %v1500_v2 = vpop.xlane.xlu0 %1499 }
 0x533   : > { %3425 = vrcp.f32 %v1500_v2 }
 0x535   : > { %v3422_v8 = vpop.eup %3421 }
 0x536   : > { %v1503_v17 = vpop.xlane.xlu1 %1502 }
 0x537   : > { %v1506_v21 = vpop.xlane.xlu0 %1505  ;;  %3427 = vrcp.f32 %v1503_v17 }
 0x538   : > { %3429 = vrcp.f32 %v1506_v21 }
 0x539   : > { %v3424_v25 = vpop.eup %3423 }
 0x53d   : > { %v3426_v26 = vpop.eup %3425 }
 0x53e   : > { %v1509_v20 = vpop.xlane.xlu1 %1508 }
 0x53f   : > { %v1512_v50 = vpop.xlane.xlu0 %1511  ;;  %3431 = vrcp.f32 %v1509_v20 }
 0x540   : > { %3433 = vrcp.f32 %v1512_v50 }
 0x541   : > { %v3428_v57 = vpop.eup %3427 }
 0x542   : > { %v3430_v58 = vpop.eup %3429 }
 0x546   : > { %v1518_v2 = vpop.xlane.xlu0 %1517 }
 0x547   : > { %3435 = vrcp.f32 %v1518_v2 }
 0x549   : > { %v3432_v46 = vpop.eup %3431 }
 0x54a   : > { %v3434_v49 = vpop.eup %3433 }
 0x56d   : > { %v1686_v3 = vpop.f32.mrb[32].mxu1 }
 0x56e   : > { %v3125_v30 = vpop.f32.mrb[33].mxu1  ;;  %v2334_v9 = vmul.f32 %v3420_v5, %v1686_v3  ;;  %v3436_v5 = vpop.eup %3435 }
 0x56f   : > { %v1689_v4 = vpop.f32.mrb[34].mxu1 }
 0x570   : > { %v3126_v7 = vpop.f32.mrb[35].mxu1 }
 0x571   : > { %v1734_v22 = vpop.f32.mrb[44].mxu0 }
 0x572   : > { %v2335_v13 = vmul.f32 %v3422_v8, %v1734_v22  ;;  %v3131_v44 = vpop.f32.mrb[45].mxu0 }
 0x573   : > { %v1737_v18 = vpop.f32.mrb[46].mxu0  ;;  %v1515_v3 = vpop.xlane.xlu1 %1514 }
 0x574   : > { %v3334_v59 = vpack.i.bf16 %v2335_v13, %v2334_v9  ;;  %v3132_v23 = vpop.f32.mrb[47].mxu0  ;;  %3437 = vrcp.f32 %v1515_v3 }
 0x575   : > { %v1782_v14 = vpop.f32.mrb[36].mxu1 }
 0x576   : > { %v3137_v24 = vpop.f32.mrb[37].mxu1  ;;  %3335 = vrot.lane.b32.xlu1 %v3334_v59, %s3540_s26  ;;  %v2336_v6 = vmul.f32 %v3424_v25, %v1782_v14  ;;  %v3371_v59 = vld [vmem:[%s4258_s2] sm:$0xff]   ;;  %s2858_s26 = sshll.u32 %s405_s20, 4 }
 0x577   : > { %v1785_v16 = vpop.f32.mrb[38].mxu1  ;;  %v1521_v30 = vpop.xlane.xlu1 %1520  ;;  %3206 = vmatpush3.bf16.msra.mxu1 %v3371_v59  ;;  %s407_s17 = scalar_lea.vmem [#allocation2], %s2858_s26 }
 0x578   : > { %v3138_v1 = vpop.f32.mrb[39].mxu1  ;;  %3439 = vrcp.f32 %v1521_v30  ;;  %3207 = vmatprep.subr.bf16.mxu1 %v3529_v15 }
 0x579   : > { %v1830_v27 = vpop.f32.mrb[48].mxu0 }
 0x57a   : > { %v2337_v28 = vmul.f32 %v3426_v26, %v1830_v27  ;;  %v3143_v19 = vpop.f32.mrb[49].mxu0 }
 0x57b   : > { %v1833_v31 = vpop.f32.mrb[50].mxu0  ;;  %v1527_v17 = vpop.xlane.xlu1 %1526  ;;  %v3372_v19 = vld [vmem:[%s4258_s2 + $0x8] sm:$0xff]  }
 0x57c   : > { %v3339_v61 = vpack.i.bf16 %v2337_v28, %v2336_v6  ;;  %v3144_v32 = vpop.f32.mrb[51].mxu0  ;;  %v1524_v4 = vpop.xlane.xlu0 %1523  ;;  %3208 = vmatpush3.bf16.msra.mxu1 %v3372_v19 }
 0x57d   : > { %v1878_v35 = vpop.f32.mrb[40].mxu1  ;;  %3441 = vrcp.f32 %v1524_v4  ;;  %3221 = vmatprep.subr.bf16.mxu1 %v3529_v15 }
 0x57e   : > { %v3149_v54 = vpop.f32.mrb[41].mxu1  ;;  %3340 = vrot.lane.b32.xlu0 %v3339_v61, %s4269_s28  ;;  %v2338_v34 = vmul.f32 %v3428_v57, %v1878_v35  ;;  %v3438_v7 = vpop.eup %3437  ;;  %3443 = vrcp.f32 %v1527_v17  ;;  %s3547_s28 = smov [#allocation2]  }
 0x57f   : > { %v1881_v33 = vpop.f32.mrb[42].mxu1 }
 0x580   : > { %v3150_v55 = vpop.f32.mrb[43].mxu1  ;;  %v1530_v23 = vpop.xlane.xlu0 %1529 }
 0x581   : > { %v1926_v62 = vpop.f32.mrb[52].mxu0  ;;  %3445 = vrcp.f32 %v1530_v23 }
 0x582   : > { %v2339_v36 = vmul.f32 %v3430_v58, %v1926_v62  ;;  %v3155_v37 = vpop.f32.mrb[53].mxu0  ;;  %v3440_v14 = vpop.eup %3439 }
 0x583   : > { %v1929_v38 = vpop.f32.mrb[54].mxu0 }
 0x584   : > { %v3344_v40 = vpack.i.bf16 %v2339_v36, %v2338_v34  ;;  %v3156_v41 = vpop.f32.mrb[55].mxu0 }
 0x585   : > { %v1974_v43 = vpop.f32.mrb[44].mxu1  ;;  %v1485_v41 = vpop.xlane.xlu1 %1484 }
 0x586   : > { %v3161_v42 = vpop.f32.mrb[45].mxu1  ;;  %3345 = vrot.lane.b32.xlu1 %v3344_v40, %s3542_s29  ;;  %v2340_v11 = vmul.f32 %v3432_v46, %v1974_v43  ;;  %s3545_s29 = smov 24   ;;  %v1488_v43 = vpop.xlane.xlu0 %1487  ;;  %3447 = vrcp.f32 %v1485_v41 }
 0x587   : > { %v1977_v45 = vpop.f32.mrb[46].mxu1  ;;  %v3442_v16 = vpop.eup %3441  ;;  %3449 = vrcp.f32 %v1488_v43 }
 0x588   : > { %v3162_v56 = vpop.f32.mrb[47].mxu1  ;;  %v3444_v32 = vpop.eup %3443 }
 0x589   : > { %v2022_v47 = vpop.f32.mrb[56].mxu0 }
 0x58a   : > { %v2341_v48 = vmul.f32 %v3434_v49, %v2022_v47  ;;  %v3167_v51 = vpop.f32.mrb[57].mxu0 }
 0x58b   : > { %v2025_v52 = vpop.f32.mrb[58].mxu0  ;;  %v3446_v54 = vpop.eup %3445 }
 0x58c   : > { %v3349_v10 = vpack.i.bf16 %v2341_v48, %v2340_v11  ;;  %v3168_v12 = vpop.f32.mrb[59].mxu0 }
 0x58e   : > { %3350 = vrot.lane.b32.xlu1 %v3349_v10, %s3543_s15  ;;  %s3546_s15 = smov 28  }
 0x590   : > { %v3448_v56 = vpop.eup %3447 }
 0x591   : > { %v2118_v60 = vpop.f32.mrb[60].mxu0  ;;  %v3450_v47 = vpop.eup %3449  ;;  %v2332_v12 = vmul.f32 %v3448_v56, %v4105_v39 }
 0x592   : > { %v3179_v29 = vpop.f32.mrb[61].mxu0  ;;  %v2343_v22 = vmul.f32 %v3436_v5, %v2118_v60  ;;  %v2333_v60 = vmul.f32 %v3450_v47, %v4107_v53 }
 0x593   : > { %v2121_v63 = vpop.f32.mrb[62].mxu0 }
 0x594   : > { %v3180_v0 = vpop.f32.mrb[63].mxu0 }
 0x5ba   : > { %v2070_v8 = vpop.f32.mrb[48].mxu1 }
 0x5bb   : > { %v2342_v9 = vmul.f32 %v3438_v7, %v2070_v8  ;;  %v3173_v13 = vpop.f32.mrb[49].mxu1 }
 0x5bc   : > { %v2073_v44 = vpop.f32.mrb[50].mxu1 }
 0x5bd   : > { %v3354_v18 = vpack.i.bf16 %v2343_v22, %v2342_v9  ;;  %v3174_v21 = vpop.f32.mrb[51].mxu1 }
 0x5bf   : > { %3355 = vrot.lane.b32.xlu1 %v3354_v18, %s3544_s18 }
 0x5c2   : > { %v2166_v24 = vpop.f32.mrb[52].mxu1 }
 0x5c3   : > { %v2344_v25 = vmul.f32 %v3440_v14, %v2166_v24  ;;  %v2214_v1 = vpop.f32.mrb[64].mxu0  ;;  %v3185_v26 = vpop.f32.mrb[53].mxu1 }
 0x5c4   : > { %v2345_v27 = vmul.f32 %v3442_v16, %v2214_v1  ;;  %v3191_v6 = vpop.f32.mrb[65].mxu0  ;;  %v2169_v28 = vpop.f32.mrb[54].mxu1 }
 0x5c5   : > { %v2217_v20 = vpop.f32.mrb[66].mxu0  ;;  %v3186_v31 = vpop.f32.mrb[55].mxu1  ;;  %v2901_v6 = vld [vmem:[%s4259_s3] ss:$0 sm:$0xff] }
 0x5c6   : > { %v3359_v50 = vpack.i.bf16 %v2345_v27, %v2344_v25  ;;  %v3192_v61 = vpop.f32.mrb[67].mxu0  ;;  %v3463_v28 = vld [vmem:[%s3666_s19] sm:$0xff] }
 0x5c7   : > { %v3464_v61 = vld [vmem:[%s3666_s19 + $0x8] sm:$0xff]  ;;  %s2792_s19 = sshll.u32 %s407_s17, 4  ;;  %s4211_s19 = int_to_ptr.vmem [resolvable:$true] %s2792_s19 }
 0x5c8   : > { %3360 = vrot.lane.b32.xlu0 %v3359_v50, %s3545_s29  ;;  %s3465_s26 = scalar_lea.vmem %s4211_s19, 256  ;;  %s3469_s29 = sshll.u32 %s3547_s28, 4  ;;  %s3470_s29 = int_to_ptr.vmem [resolvable:$false] %s3469_s29 }
 0x5c9   : > { %p3466_p11 = scmp.ne.s32.totalorder %s4211_s19, %s3465_s26  ;;  %p3472_p0 = scmp.lt.s32.totalorder %s4211_s19, %s3470_s29 }
 0x5ca   : > { %v2262_v35 = vpop.f32.mrb[56].mxu1 }
 0x5cb   : > { %v2346_v33 = vmul.f32 %v3444_v32, %v2262_v35  ;;  %v2310_v57 = vpop.f32.mrb[68].mxu0  ;;  %v3197_v55 = vpop.f32.mrb[57].mxu1  ;;  %p3467_p12 = pnand %p3466_p11, %p3652_p5 }
 0x5cc   : > { %v2347_v58 = vmul.f32 %v3446_v54, %v2310_v57  ;;  %v3203_v62 = vpop.f32.mrb[69].mxu0  ;;  %v2265_v34 = vpop.f32.mrb[58].mxu1 }
 0x5cd   : > { %v2313_v36 = vpop.f32.mrb[70].mxu0  ;;  %v3198_v37 = vpop.f32.mrb[59].mxu1  ;;  %p3468_p13 = pneg %p3467_p12 }
 0x5ce   : > { %v3364_v38 = vpack.i.bf16 %v2347_v58, %v2346_v33  ;;  %v3204_v40 = vpop.f32.mrb[71].mxu0 }
 0x5d0   : > { %3365 = vrot.lane.b32.xlu1 %v3364_v38, %s3546_s15  ;;  %s3471_s15 = scalar_lea.vmem %s3470_s29, 512 }
 0x5d1   : > { %p3473_p1 = scmp.lt.s32.totalorder %s3471_s15, %s3465_s26 }
 0x5d3   : > { %p3474_p2 = por %p3473_p1, %p3472_p0 }
 0x5d5   : > { %p3475_p3 = pnand %p3474_p2, %p3468_p13 }
 0x5e8   : > { %v3336_v42 = vpop.permute.xlu1 %3335 }
 0x5e9   : > { %v3338_v11 = vunpack.i.h.bf16 %v3336_v42  ;;  %v3337_v48 = vunpack.i.l.bf16 %v3336_v42  ;;  %v3373_v42 = vld [vmem:[%s4264_s8] sm:$0xff]  }
 0x5ea   : > { %3214 = vmatpush3.bf16.msra.mxu0 %v3373_v42 }
 0x5eb   : > { %v2405_v30 = vsel %vm588_vm2, %v2333_v60, %v3338_v11  ;;  %v2404_v4 = vsel %vm588_vm2, %v2332_v12, %v3337_v48  ;;  %3215 = vmatprep.subr.bf16.mxu0 %v3529_v15 }
 0x5f0   : > { %v3341_v49 = vpop.permute.xlu0 %3340 }
 0x5f1   : > { %v3343_v51 = vunpack.i.h.bf16 %v3341_v49  ;;  %v3342_v52 = vunpack.i.l.bf16 %v3341_v49 }
 0x5f3   : > { %v2407_v8 = vsel %vm1386_vm4, %v2405_v30, %v3343_v51  ;;  %v2406_v22 = vsel %vm1386_vm4, %v2404_v4, %v3342_v52  ;;  %v3375_v4 = vld [vmem:[%s4266_s10] sm:$0xff]  }
 0x5f8   : > { %v3346_v45 = vpop.permute.xlu1 %3345 }
 0x5f9   : > { %v3348_v29 = vunpack.i.h.bf16 %v3346_v45  ;;  %v3347_v63 = vunpack.i.l.bf16 %v3346_v45  ;;  %v3374_v45 = vld [vmem:[%s4264_s8 + $0x8] sm:$0xff]  }
 0x5fa   : > { %3216 = vmatpush3.bf16.msra.mxu0 %v3374_v45 }
 0x5fb   : > { %v2410_v53 = vsel %vm2408_vm5, %v2407_v8, %v3348_v29  ;;  %v2409_v13 = vsel %vm2408_vm5, %v2406_v22, %v3347_v63  ;;  %v2903_v63 = vld [vmem:[%s4263_s7] ss:$0 sm:$0xff]  ;;  %v3378_v8 = vld [vmem:[%s4266_s10 + $0x18] sm:$0xff]  }
 0x5fc   : > { %v3379_v22 = vld [vmem:[%s4266_s10 + $0x20] sm:$0xff]  }
 0x600   : > { %v3351_v46 = vpop.permute.xlu1 %3350 }
 0x601   : > { %v3353_v2 = vunpack.i.h.bf16 %v3351_v46  ;;  %v3352_v3 = vunpack.i.l.bf16 %v3351_v46 }
 0x603   : > { %v2413_v44 = vsel %vm2411_vm6, %v2410_v53, %v3353_v2  ;;  %v2412_v17 = vsel %vm2411_vm6, %v2409_v13, %v3352_v3  ;;  %v3382_v53 = vld [vmem:[%s4266_s10 + $0x38] sm:$0xff]   ;;  %v2904_v13 = vld [vmem:[%s4265_s9] ss:$0 sm:$0xff] }
 0x631   : > { %v3356_v10 = vpop.permute.xlu1 %3355 }
 0x632   : > { %v3358_v5 = vunpack.i.h.bf16 %v3356_v10  ;;  %v3357_v7 = vunpack.i.l.bf16 %v3356_v10  ;;  %v2902_v10 = vld [vmem:[%s4262_s6] ss:$0 sm:$0xff] }
 0x634   : > { %v2416_v21 = vsel %vm2414_vm7, %v2413_v44, %v3358_v5  ;;  %v2415_v59 = vsel %vm2414_vm7, %v2412_v17, %v3357_v7  ;;  %v3376_v5 = vld [vmem:[%s4266_s10 + $0x8] sm:$0xff]   ;;  %v3377_v7 = vld [vmem:[%s4266_s10 + $0x10] sm:$0xff]  }
 0x63a   : > { %v3361_v0 = vpop.permute.xlu0 %3360 }
 0x63b   : > { %v3363_v39 = vunpack.i.h.bf16 %v3361_v0  ;;  %v3362_v9 = vunpack.i.l.bf16 %v3361_v0 }
 0x63d   : > { %v2419_v24 = vsel %vm2417_vm8, %v2416_v21, %v3363_v39  ;;  %v2418_v16 = vsel %vm2417_vm8, %v2415_v59, %v3362_v9  ;;  %v3380_v39 = vld [vmem:[%s4266_s10 + $0x28] sm:$0xff]   ;;  %v3381_v9 = vld [vmem:[%s4266_s10 + $0x30] sm:$0xff]  }
 0x642   : > { %v3366_v18 = vpop.permute.xlu1 %3365 }
 0x643   : > { %v3368_v23 = vunpack.i.h.bf16 %v3366_v18  ;;  %v3367_v14 = vunpack.i.l.bf16 %v3366_v18 }
 0x645   : > { %v2422_v25 = vsel %vm2420_vm9, %v2419_v24, %v3368_v23  ;;  %v2421_v1 = vsel %vm2420_vm9, %v2418_v16, %v3367_v14 }
 0x646   : > { %v2427_v26 = vpack.c.bf16 %v2422_v25, %v2421_v1 }
 0x648   : > { %3210 = vmatmul.mubr.msk.bf16.vlgmr.msra.gmra.mrb[60].mxu1 %vm420_vm0, %v2427_v26 }
 0x649   : > { %3237 = vmatprep.mubr.msk.bf16.mxu1 %vm3530_vm1, %v3529_v15  ;;  %3222 = vmatpush3.bf16.msra.mxu1 %v3375_v4 }
 0x64a   : > { %3223 = vmatprep.subr.bf16.mxu1 %v3529_v15 }
 0x64d   : > { %3224 = vmatpush3.bf16.msra.mxu1 %v3376_v5 }
 0x64e   : > { %3225 = vmatprep.subr.bf16.mxu1 %v3529_v15 }
 0x651   : > { %3226 = vmatpush3.bf16.msra.mxu1 %v3377_v7 }
 0x652   : > { %3227 = vmatprep.subr.bf16.mxu1 %v3529_v15 }
 0x655   : > { %3228 = vmatpush3.bf16.msra.mxu1 %v3378_v8 }
 0x656   : > { %3229 = vmatprep.subr.bf16.mxu1 %v3529_v15 }
 0x659   : > { %3230 = vmatpush3.bf16.msra.mxu1 %v3379_v22  ;;  %v2908_v22 = vld [vmem:[%s4267_s11] ss:$0 sm:$0xff] }
 0x65a   : > { %3231 = vmatprep.subr.bf16.mxu1 %v3529_v15 }
 0x65d   : > { %3232 = vmatpush3.bf16.msra.mxu1 %v3380_v39 }
 0x65e   : > { %3233 = vmatprep.subr.bf16.mxu1 %v3529_v15 }
 0x661   : > { %3234 = vmatpush3.bf16.msra.mxu1 %v3381_v9 }
 0x662   : > { %3235 = vmatprep.subr.bf16.mxu1 %v3529_v15 }
 0x665   : > { %3236 = vmatpush3.bf16.msra.mxu1 %v3382_v53 }
 0x71b   : > { %v2477_v27 = vpop.f32.mrb[60].mxu1 }
 0x71c   : > { %v2484_v19 = vadd.f32 %v3463_v28, %v2477_v27  ;;  %v3211_v20 = vpop.f32.mrb[61].mxu1 }
 0x71d   : > { %v2480_v31 = vpop.f32.mrb[62].mxu1 }
 0x71e   : > { %v4137_v50 = vadd.f32 %v2901_v6, %v2484_v19  ;;  %v2485_v32 = vadd.f32 %v3464_v61, %v2480_v31  ;;  %v3212_v35 = vpop.f32.mrb[63].mxu1 }
 0x720   : > { %v4140_v54 = vadd.f32 %v2901_v6, %v2485_v32  ;;  %v2497_v33 = vsel %vm420_vm0, %v4137_v50, 0.0 }
 0x721   : > { %2498 = vadd.xlane.f32.xlu0 %v2497_v33 }
 0x722   : > { %v2500_v57 = vsel %vm420_vm0, %v4140_v54, 0.0 }
 0x723   : > { %2501 = vadd.xlane.f32.xlu1 %v2500_v57 }
 0x7ae   : > { %v2499_v55 = vpop.xlane.xlu0 %2498 }
 0x7af   : > { %v2503_v58 = vmul.f32 0.03125, %v2499_v55 }
 0x7b0   : > { %v2502_v62 = vpop.xlane.xlu1 %2501 }
 0x7b1   : > { %v2505_v34 = vsub.f32 %v4137_v50, %v2503_v58  ;;  %v2504_v36 = vmul.f32 0.03125, %v2502_v62 }
 0x7b3   : > { %v2506_v37 = vsub.f32 %v4140_v54, %v2504_v36  ;;  %v2507_v38 = vmul.f32 %v2505_v34, %v2505_v34 }
 0x7b5   : > { %v2509_v40 = vsel %vm420_vm0, %v2507_v38, 0.0  ;;  %v2508_v41 = vmul.f32 %v2506_v37, %v2506_v37 }
 0x7b6   : > { %2510 = vadd.xlane.f32.xlu0 %v2509_v40 }
 0x7b7   : > { %v2512_v43 = vsel %vm420_vm0, %v2508_v41, 0.0 }
 0x7ba   : > { %2513 = vadd.xlane.f32.xlu0 %v2512_v43 }
 0x843   : > { %v2511_v46 = vpop.xlane.xlu0 %2510 }
 0x844   : > { %v2515_v56 = vmul.f32 0.03125, %v2511_v46 }
 0x846   : > { %v2517_v49 = vadd.f32 1e-05, %v2515_v56 }
 0x847   : > { %v2514_v47 = vpop.xlane.xlu0 %2513 }
 0x848   : > { %3451 = vrsqrt.f32 %v2517_v49  ;;  %v2516_v11 = vmul.f32 0.03125, %v2514_v47 }
 0x84a   : > { %v2518_v48 = vadd.f32 1e-05, %v2516_v11 }
 0x84c   : > { %3453 = vrsqrt.f32 %v2518_v48 }
 0x852   : > { %v3452_v51 = vpop.eup %3451 }
 0x853   : > { %v2521_v52 = vmul.f32 %v3452_v51, %v2505_v34 }
 0x855   : > { %v2529_v60 = vmul.f32 %v2902_v10, %v2521_v52 }
 0x856   : > { %v3454_v12 = vpop.eup %3453 }
 0x857   : > { %v2522_v29 = vmul.f32 %v3454_v12, %v2506_v37  ;;  %v2537_v2 = vadd.f32 %v2903_v63, %v2529_v60 }
 0x859   : > { %v2530_v0 = vmul.f32 %v2902_v10, %v2522_v29 }
 0x85b   : > { %v2538_v3 = vadd.f32 %v2903_v63, %v2530_v0 }
 0x85d   : > { %v2543_v30 = vpack.c.bf16 %v2538_v3, %v2537_v2 }
 0x85f   : > { %3218 = vmatmul.mubr.msk.bf16.vlgmr.msra.gmra.mrb[72].mxu0 %vm420_vm0, %v2543_v30 }
 0x932   : > { %v2600_v44 = vpop.f32.mrb[72].mxu0 }
 0x933   : > { %v2601_v17 = vadd.f32 %v2904_v13, %v2600_v44  ;;  %v3219_v18 = vpop.f32.mrb[73].mxu0 }
 0x934   : > { %v2603_v21 = vpop.f32.mrb[74].mxu0 }
 0x935   : > { %v2607_v59 = vmul.f32 0.70710677, %v2601_v17  ;;  %v2604_v23 = vadd.f32 %v2904_v13, %v2603_v21  ;;  %v3220_v14 = vpop.f32.mrb[75].mxu0 }
 0x937   : > { %v2609_v24 = vand.u32 2147483647, %v2607_v59  ;;  %v2608_v16 = vmul.f32 0.70710677, %v2604_v23  ;;  %vm2649_vm10 = vcmp.lt.f32.partialorder %v2607_v59, 0.0 }
 0x939   : > { %v2611_v25 = vmul.f32 0.3275911, %v2609_v24  ;;  %v2610_v15 = vand.u32 2147483647, %v2608_v16  ;;  %v2637_v6 = vsub.f32 0.0, %v2609_v24  ;;  %vm2650_vm11 = vcmp.lt.f32.partialorder %v2608_v16, 0.0 }
 0x93b   : > { %v2613_v1 = vadd.f32 1.0, %v2611_v25  ;;  %v2612_v26 = vmul.f32 0.3275911, %v2610_v15  ;;  %v2638_v28 = vsub.f32 0.0, %v2610_v15  ;;  %v2639_v20 = vmul.f32 %v2637_v6, %v2609_v24 }
 0x93d   : > { %3455 = vrcp.f32 %v2613_v1  ;;  %v2614_v27 = vadd.f32 1.0, %v2612_v26  ;;  %v2640_v35 = vmul.f32 %v2638_v28, %v2610_v15  ;;  %v2641_v33 = vmul.f32 1.442695, %v2639_v20 }
 0x93f   : > { %3457 = vrcp.f32 %v2614_v27  ;;  %v2643_v34 = vmul.f32 1.442695, %v2640_v35 }
 0x940   : > { %3459 = vpow2.f32 %v2641_v33 }
 0x941   : > { %3461 = vpow2.f32 %v2643_v34 }
 0x947   : > { %v3456_v19 = vpop.eup %3455 }
 0x948   : > { %v2619_v31 = vmul.f32 1.0614054, %v3456_v19 }
 0x949   : > { %v3458_v61 = vpop.eup %3457 }
 0x94a   : > { %v2621_v32 = vadd.f32 -1.4531521, %v2619_v31  ;;  %v2620_v57 = vmul.f32 1.0614054, %v3458_v61  ;;  %v3460_v49 = vpop.eup %3459 }
 0x94b   : > { %v3462_v51 = vpop.eup %3461 }
 0x94c   : > { %v2623_v55 = vmul.f32 %v3456_v19, %v2621_v32  ;;  %v2622_v58 = vadd.f32 -1.4531521, %v2620_v57 }
 0x94e   : > { %v2625_v62 = vadd.f32 1.4214138, %v2623_v55  ;;  %v2624_v36 = vmul.f32 %v3458_v61, %v2622_v58 }
 0x950   : > { %v2627_v37 = vmul.f32 %v3456_v19, %v2625_v62  ;;  %v2626_v38 = vadd.f32 1.4214138, %v2624_v36 }
 0x952   : > { %v2629_v40 = vadd.f32 -0.28449672, %v2627_v37  ;;  %v2628_v41 = vmul.f32 %v3458_v61, %v2626_v38 }
 0x954   : > { %v2631_v43 = vmul.f32 %v3456_v19, %v2629_v40  ;;  %v2630_v42 = vadd.f32 -0.28449672, %v2628_v41 }
 0x956   : > { %v2633_v45 = vadd.f32 0.2548296, %v2631_v43  ;;  %v2632_v46 = vmul.f32 %v3458_v61, %v2630_v42 }
 0x958   : > { %v2635_v56 = vmul.f32 %v3456_v19, %v2633_v45  ;;  %v2634_v47 = vadd.f32 0.2548296, %v2632_v46 }
 0x95a   : > { %v2645_v11 = vmul.f32 %v3460_v49, %v2635_v56  ;;  %v2636_v48 = vmul.f32 %v3458_v61, %v2634_v47 }
 0x95c   : > { %v2647_v52 = vsub.f32 1.0, %v2645_v11  ;;  %v2646_v10 = vmul.f32 %v3462_v51, %v2636_v48 }
 0x95e   : > { %v2651_v12 = vsub.f32 0.0, %v2647_v52  ;;  %v2648_v60 = vsub.f32 1.0, %v2646_v10 }
 0x960   : > { %v2653_v29 = vsel %vm2649_vm10, %v2651_v12, %v2647_v52  ;;  %v2652_v0 = vsub.f32 0.0, %v2648_v60 }
 0x961   : > { %v2655_v63 = vadd.f32 1.0, %v2653_v29 }
 0x962   : > { %v2654_v2 = vsel %vm2650_vm11, %v2652_v0, %v2648_v60 }
 0x963   : > { %v2657_v3 = vmul.f32 0.5, %v2655_v63  ;;  %v2656_v30 = vadd.f32 1.0, %v2654_v2 }
 0x965   : > { %v2658_v4 = vmul.f32 0.5, %v2656_v30  ;;  %v2659_v5 = vmul.f32 %v2657_v3, %v2601_v17 }
 0x967   : > { %v2660_v7 = vmul.f32 %v2658_v4, %v2604_v23 }
 0x969   : > { %v2677_v8 = vpack.c.bf16 %v2660_v7, %v2659_v5 }
 0x96b   : > { %3238 = vmatmul.mubr.bf16.vlgmr.msra.gmra.mrb[64].mxu1 %v2677_v8 }
 0xa3e   : > { %v2767_v39 = vpop.f32.mrb[64].mxu1 }
 0xa3f   : > { %v2768_v9 = vadd.f32 %v2908_v22, %v2767_v39  ;;  %v3239_v53 = vpop.f32.mrb[65].mxu1 }
 0xa40   : > { %v2770_v13 = vpop.f32.mrb[66].mxu1 }
 0xa41   : > { %v2774_v44 = vadd.f32 %v2768_v9, %v4137_v50  ;;  %v2771_v17 = vadd.f32 %v2908_v22, %v2770_v13  ;;  %v3240_v18 = vpop.f32.mrb[67].mxu1 }
 0xa43   : > { %2776 = vst.msk [vmem:[%s407_s17] sm:$0xff] %vm420_vm0, %v2774_v44  ;;  %v2775_v21 = vadd.f32 %v2771_v17, %v4140_v54 }
 0xa45   : > { %2777 = vst.msk [vmem:[%s407_s17 + $0x8] sm:$0xff] %vm420_vm0, %v2775_v21 }
 0xa46   : > { %3478 = shalt.err (!%p3475_p3)
}
 0xa47   : > { %s3479_s20 = scalar_lea.hbm %s4207_s0, 256  ;;  %s3483_s18 = scalar_lea.hbm %s4268_s12, 512 }
 0xa48   : > { %p3480_p4 = scmp.ne.s32.totalorder %s4207_s0, %s3479_s20  ;;  %p3484_p9 = scmp.lt.u32.totalorder %s4207_s0, %s4268_s12 }
 0xa49   : > { %p3485_p10 = scmp.lt.u32.totalorder %s3483_s18, %s3479_s20  ;;  %p3487_p12 = scmp.lt.u32.totalorder %s3479_s20, %s4207_s0 }
 0xa4a   : > { %p3481_p7 = pnand %p3480_p4, %p3652_p5 }
 0xa4b   : > { %p3486_p11 = por %p3485_p10, %p3484_p9 }
 0xa4c   : > { %p3482_p8 = pneg %p3481_p7 }
 0xa4d   : > { %p3488_p13 = por %p3487_p12, %p3486_p11 }
 0xa4f   : > { %p3489_p0 = pnand %p3488_p13, %p3482_p8 }
 0xa51   : > { %3492 = shalt.err (!%p3489_p0)
}
 0xa52   : > { %s3548_s26 = smov 128   ;;  %s4274_s15 = smov 8  }
 0xa53   : > { %3241 = dma.vmem_to_hbm [thread:$0]  (%p3652_p5), %s4211_s19, 256, %s4207_s0, %s4214_s25, %s3548_s26, %s3548_s26, %s4274_s15  }
 0xa54 PF: > { %p3247_p1 = scmp.ge.s32.totalorder %s3527_s24, 2  ;;  %s2807_s16 = sand.u32 1, %s3515_s21  }
 0xa55   : > { %s2808_s20 = scalar_lea.sflag [#allocation3], %s2807_s16 }
 0xa56   : > { %p3244_p2 = pnand %p3247_p1, %p3656_p6 }
 0xa58   : > { %3510 = dma.done.wait (!%p3244_p2), %s2808_s20, 256  }
 0xa59   : > { %3512 = vsyncadd (!%p3244_p2), %s2808_s20, 4294967040  ;;  %p22_p3 = scmp.ge.s32.totalorder %s3639_s27, 4   ;;  %s4275_s21 = smov %s3519_s22 }
 0xa5a   : > { %s4276_s22 = smov %s3523_s23  ;;  %s4277_s23 = smov %s3650_s30 }
 0xa5b   : > { %s4278_s24 = smov %s3639_s27  ;;  %24 = sbr.rel (!%p22_p3) target bundleno = 5 (0x5), region = 103 }
 0xa62   :  { %2813 = vsyncpa [#allocation3], 1 }
 0xa63   :  { %2815 = vsyncpa [#allocation3 + $0x1], 1 }

</bundles_post_ra>
